<compile_context>
chip_gen: v6e
topology: v6e:2x2x1
jax: 0.10.0
libtpu: 0.0.40
codegen_flags: <defaults>
</compile_context>

<pallas_src>
import functools
import math

import jax
import jax.numpy as jnp
from jax.experimental import pallas as pl
from jax.experimental.pallas import tpu as pltpu


_INV_SQRT2 = 1.0 / math.sqrt(2.0)


def _round_up(x, m):
    return ((x + m - 1) // m) * m


def _erf(z):
    # Abramowitz & Stegun 7.1.26 rational approximation (|err| ~1e-7 in f32;
    # in bf16 the rounding noise dominates).  exp + reciprocal go to the EUP,
    # everything else is VPU mul/add in z.dtype.
    a1, a2, a3, a4, a5 = (0.254829592, -0.284496736, 1.421413741,
                          -1.453152027, 1.061405429)
    p = 0.3275911
    dt = z.dtype
    za = jnp.abs(z)
    # Reciprocal always evaluated in f32 (robust on every TPU generation).
    t = pl.reciprocal((1.0 + p * za).astype(jnp.float32), approx=True).astype(dt)
    poly = ((((a5 * t + a4) * t + a3) * t + a2) * t + a1) * t
    erf_abs = 1.0 - poly * jnp.exp(-za * za)
    return jnp.where(z >= 0, erf_abs, -erf_abs)


def _gelu(x):
    # PyTorch nn.GELU() default (erf-based) GELU.
    return 0.5 * x * (1.0 + _erf(x * _INV_SQRT2))


def convnext_kernel(x_ref, dww_ref, dwb_ref, lnw_ref, lnb_ref,
                    w1_ref, b1_ref, w2_ref, b2_ref, o_ref,
                    *, tile_t, lpad, pad, dilation, kernel_size, eps,
                    c_true, gelu_bf16):
    # x_ref: (win8, C_pad) halo window for this (batch, T-tile) grid point,
    #        laid out so original tile row j sits at window row lpad + j.
    # o_ref: (tile_t, C_pad)
    C = o_ref.shape[-1]
    cdt = jnp.bfloat16 if gelu_bf16 else jnp.float32

    # Residual: static, sublane-aligned slice (lpad is a multiple of 8).
    x_res = x_ref[lpad:lpad + tile_t, :].astype(jnp.float32)

    # ---- depthwise Conv1d (groups=channels), "same" padding -----------------
    y = jnp.broadcast_to(dwb_ref[...].astype(jnp.float32), (tile_t, C))
    for k in range(kernel_size):                       # static unroll
        off = lpad - pad + k * dilation                # static in-window offset
        xk = x_ref[off:off + tile_t, :].astype(jnp.float32)
        wk = dww_ref[k:k + 1, :].astype(jnp.float32)
        y = y + xk * wk

    # ---- LayerNorm over the *true* channels (eps=1e-6, biased variance) -----
    inv_c = 1.0 / float(c_true)
    mean = jnp.sum(y, axis=-1, keepdims=True) * inv_c  # padded channels are 0
    yc = y - mean
    if c_true != C:                                    # mask padded channels
        cmask = jax.lax.broadcasted_iota(jnp.int32, (1, C), 1) < c_true
        yc = jnp.where(cmask, yc, 0.0)
    var = jnp.sum(yc * yc, axis=-1, keepdims=True) * inv_c
    y = yc * jax.lax.rsqrt(var + eps)
    y = y * lnw_ref[...] + lnb_ref[...]

    # ---- pointwise conv 1 (C -> H) + GELU, bf16 MXU / f32 accumulation ------
    h = jnp.dot(y.astype(jnp.bfloat16), w1_ref[...],
                preferred_element_type=jnp.float32)
    h = h.astype(cdt) + b1_ref[...].astype(cdt)
    h = _gelu(h)

    # ---- pointwise conv 2 (H -> C) -------------------------------------------
    out = jnp.dot(h.astype(jnp.bfloat16), w2_ref[...],
                  preferred_element_type=jnp.float32)
    out = out + b2_ref[...]

    # gamma is None for the default layer_scale_init_value=-1.0 -> no scaling.
    o_ref[...] = (x_res + out).astype(o_ref.dtype)


def _use_bf16_gelu():
    # bf16 VALU/EUP exist on v6e and newer; keep f32 GELU on v5e and older.
    try:
        kind = jax.devices()[0].device_kind.lower()
    except Exception:
        return False
    return ("v6" in kind) or ("v7" in kind) or ("tpu7" in kind)


def convnext_bottleneck(x_nct, params, *, kernel_size=3, dilation=1,
                        tile_t_target=256):
    """x_nct: (B, C, T), same layout as the PyTorch Conv1d-based module."""
    B, C, T = x_nct.shape
    H = params["w1"].shape[1]
    eff = dilation * (kernel_size - 1)
    assert eff % 2 == 0, (
        "same-length output requires dilation*(kernel_size-1) to be even "
        "(matches the PyTorch module's get_padding/'same' assumption)")
    pad = eff // 2

    # ---- tiling geometry ------------------------------------------------------
    tile_t = max(8, _round_up(min(tile_t_target, _round_up(T, 8)), 8))
    T_pad = _round_up(T, tile_t)                 # no silent fall back to full T
    nt = T_pad // tile_t
    lpad = _round_up(pad, 8) if pad > 0 else 0   # 8-aligned left halo
    win8 = _round_up(lpad + tile_t + pad, 8)     # rows per halo window
    Tp = (nt - 1) * tile_t + win8                # padded time extent

    # Lane-dense channel / hidden dims (masked LN keeps the math exact).
    C_pad = _round_up(C, 128)
    H_pad = _round_up(H, 128)

    # ---- layout glue (XLA): NCT -> BTC, zero pad, gather halo windows --------
    x_btc = jnp.transpose(x_nct, (0, 2, 1)).astype(jnp.float32)
    x_btc = jnp.pad(x_btc, ((0, 0), (lpad, Tp - lpad - T), (0, C_pad - C)))
    x_win = jnp.stack([x_btc[:, t * tile_t:t * tile_t + win8, :]
                       for t in range(nt)], axis=1)      # (B, nt, win8, C_pad)

    # ---- parameters: zero-pad to (C_pad, H_pad); matmul weights in bf16 -------
    def pad2(a, r, c):
        a = jnp.asarray(a, jnp.float32)
        return jnp.pad(a, ((0, r - a.shape[0]), (0, c - a.shape[1])))

    dw_w = pad2(params["dw_w"], kernel_size, C_pad)
    dw_b = pad2(params["dw_b"], 1, C_pad)
    ln_w = pad2(params["ln_w"], 1, C_pad)
    ln_b = pad2(params["ln_b"], 1, C_pad)
    w1 = pad2(params["w1"], C_pad, H_pad).astype(jnp.bfloat16)
    b1 = pad2(params["b1"], 1, H_pad)
    w2 = pad2(params["w2"], H_pad, C_pad).astype(jnp.bfloat16)
    b2 = pad2(params["b2"], 1, C_pad)

    flops = B * nt * (4 * tile_t * C_pad * H_pad
                      + 2 * tile_t * C_pad * kernel_size)
    bytes_accessed = (B * nt * win8 * C_pad * 4          # x halo windows
                      + B * T_pad * C_pad * 4            # output
                      + 2 * C_pad * H_pad * 2            # bf16 w1 + w2
                      + ((kernel_size + 5) * C_pad + H_pad) * 4)
    cost = pl.CostEstimate(flops=int(flops),
                           transcendentals=int(2 * B * T_pad * H_pad),
                           bytes_accessed=int(bytes_accessed))

    def build(single_buffer_params, gelu_bf16):
        kern = functools.partial(
            convnext_kernel, tile_t=tile_t, lpad=lpad, pad=pad,
            dilation=dilation, kernel_size=kernel_size, eps=1e-6,
            c_true=C, gelu_bf16=gelu_bf16)

        def const_spec(shape):
            idx = lambda b, t: (0,) * len(shape)
            if single_buffer_params:
                # Constant block index -> one buffer is enough; halves weight
                # VMEM vs. default double buffering.
                return pl.BlockSpec(shape, idx, pipeline_mode=pl.Buffered(1))
            return pl.BlockSpec(shape, idx)

        return pl.pallas_call(
            kern,
            out_shape=jax.ShapeDtypeStruct((B, T_pad, C_pad), x_nct.dtype),
            grid_spec=pltpu.PrefetchScalarGridSpec(
                num_scalar_prefetch=0,
                grid=(B, nt),
                in_specs=[
                    # Per-tile halo window: bounded VMEM, pipelined per tile.
                    pl.BlockSpec((None, None, win8, C_pad),
                                 lambda b, t: (b, t, 0, 0)),
                    const_spec((kernel_size, C_pad)),    # dw weight
                    const_spec((1, C_pad)),              # dw bias
                    const_spec((1, C_pad)),              # ln weight
                    const_spec((1, C_pad)),              # ln bias
                    const_spec((C_pad, H_pad)),          # pw1 weight (bf16)
                    const_spec((1, H_pad)),              # pw1 bias
                    const_spec((H_pad, C_pad)),          # pw2 weight (bf16)
                    const_spec((1, C_pad)),              # pw2 bias
                ],
                out_specs=pl.BlockSpec((None, tile_t, C_pad),
                                       lambda b, t: (b, t, 0)),
            ),
            compiler_params=pltpu.CompilerParams(
                dimension_semantics=("parallel", "parallel"),
                vmem_limit_bytes=48 * 1024 * 1024),
            cost_estimate=cost,
        )

    args = (x_win, dw_w, dw_b, ln_w, ln_b, w1, b1, w2, b2)
    try:
        out = build(True, _use_bf16_gelu())(*args)
    except Exception:
        # Conservative fallback: default double buffering, f32 GELU.
        out = build(False, False)(*args)

    out = out[:, :T, :C]                                 # drop T / C padding
    return jnp.transpose(out, (0, 2, 1))                 # BTC -> NCT


def convnext_reference(x_nct, params, *, kernel_size=3, dilation=1):
    """Pure-JAX f32 reference with exact erf GELU (matches the PyTorch module)."""
    B, C, T = x_nct.shape
    pad = dilation * (kernel_size - 1) // 2
    x = jnp.transpose(x_nct, (0, 2, 1)).astype(jnp.float32)      # (B, T, C)
    xp = jnp.pad(x, ((0, 0), (pad, pad), (0, 0)))
    y = jnp.zeros((B, T, C), jnp.float32) + params["dw_b"][None]
    for k in range(kernel_size):
        y = y + xp[:, k * dilation:k * dilation + T, :] * params["dw_w"][k][None, None, :]
    mean = y.mean(-1, keepdims=True)
    var = ((y - mean) ** 2).mean(-1, keepdims=True)
    y = (y - mean) * jax.lax.rsqrt(var + 1e-6)
    y = y * params["ln_w"][0] + params["ln_b"][0]
    h = y @ params["w1"] + params["b1"][0]
    h = 0.5 * h * (1.0 + jax.lax.erf(h * _INV_SQRT2))
    out = h @ params["w2"] + params["b2"][0]
    return jnp.transpose(x + out, (0, 2, 1))


def init_params(key, channels, kernel_size=3, hidden_dim_rate=4):
    hidden = int(channels * hidden_dim_rate)
    ks = jax.random.split(key, 6)
    # dw_w corresponds to Conv1d weight (C, 1, K) stored transposed as (K, C).
    return {
        "dw_w": 0.2 * jax.random.normal(ks[0], (kernel_size, channels), jnp.float32),
        "dw_b": 0.1 * jax.random.normal(ks[1], (1, channels), jnp.float32),
        "ln_w": jnp.ones((1, channels), jnp.float32),
        "ln_b": jnp.zeros((1, channels), jnp.float32),
        "w1": 0.2 * jax.random.normal(ks[2], (channels, hidden), jnp.float32),
        "b1": 0.1 * jax.random.normal(ks[3], (1, hidden), jnp.float32),
        "w2": 0.2 * jax.random.normal(ks[4], (hidden, channels), jnp.float32),
        "b2": 0.1 * jax.random.normal(ks[5], (1, channels), jnp.float32),
        # gamma omitted: default layer_scale_init_value=-1.0 -> gamma is None.
    }


if __name__ == "__main__":
    B, C, T = 2, 8, 32
    key = jax.random.PRNGKey(0)
    kx, kp = jax.random.split(key)
    x = jax.random.normal(kx, (B, C, T), jnp.float32)
    params = init_params(kp, C)

    # Small tile target so the demo exercises T tiling + the halo windows
    # (grid = (2, 2)); real workloads use the default tile_t_target=256.
    out = convnext_bottleneck(x, params, tile_t_target=16)
    out = jax.block_until_ready(out)
    assert out.shape == (B, C, T)

    ref = convnext_reference(x, params)
    max_err = float(jnp.max(jnp.abs(out - ref)))
    assert max_err < 1e-1, f"max abs err vs f32 reference: {max_err}"
    print("KERNEL_OK")
</pallas_src>

<mosaic_0001>
module attributes {stable_mosaic.version = 11 : i64} {
  func.func @convnext_kernel(%arg0: i32, %arg1: i32, %arg2: memref<1x1x32x128xf32, #tpu.memory_space<vmem>>, %arg3: memref<3x128xf32, #tpu.memory_space<vmem>>, %arg4: memref<1x128xf32, #tpu.memory_space<vmem>>, %arg5: memref<1x128xf32, #tpu.memory_space<vmem>>, %arg6: memref<1x128xf32, #tpu.memory_space<vmem>>, %arg7: memref<128x128xbf16, #tpu.memory_space<vmem>>, %arg8: memref<1x128xf32, #tpu.memory_space<vmem>>, %arg9: memref<128x128xbf16, #tpu.memory_space<vmem>>, %arg10: memref<1x128xf32, #tpu.memory_space<vmem>>, %arg11: memref<1x16x128xf32, #tpu.memory_space<vmem>>) attributes {dimension_semantics = [#tpu.dimension_semantics<parallel>, #tpu.dimension_semantics<parallel>], iteration_bounds = array<i64: 2, 2>, scalar_prefetch = 0 : i64, scratch_operands = 0 : i64, tpu.core_type = #tpu.core_type<tc>, window_params = [{transform_indices = @transform_0, window_bounds = array<i64: 1, 1, 32, 128>}, {pipeline_mode = #tpu.pipeline_mode<synchronous>, transform_indices = @transform_1, window_bounds = array<i64: 3, 128>}, {pipeline_mode = #tpu.pipeline_mode<synchronous>, transform_indices = @transform_2, window_bounds = array<i64: 1, 128>}, {pipeline_mode = #tpu.pipeline_mode<synchronous>, transform_indices = @transform_3, window_bounds = array<i64: 1, 128>}, {pipeline_mode = #tpu.pipeline_mode<synchronous>, transform_indices = @transform_4, window_bounds = array<i64: 1, 128>}, {pipeline_mode = #tpu.pipeline_mode<synchronous>, transform_indices = @transform_5, window_bounds = array<i64: 128, 128>}, {pipeline_mode = #tpu.pipeline_mode<synchronous>, transform_indices = @transform_6, window_bounds = array<i64: 1, 128>}, {pipeline_mode = #tpu.pipeline_mode<synchronous>, transform_indices = @transform_7, window_bounds = array<i64: 128, 128>}, {pipeline_mode = #tpu.pipeline_mode<synchronous>, transform_indices = @transform_8, window_bounds = array<i64: 1, 128>}, {transform_indices = @transform_9, window_bounds = array<i64: 1, 16, 128>}]} {
    %c0 = arith.constant 0 : index
    %c0_0 = arith.constant 0 : index
    %c8 = arith.constant 8 : index
    %c0_1 = arith.constant 0 : index
    %0 = vector.load %arg2[%c0, %c0_0, %c8, %c0_1] : memref<1x1x32x128xf32, #tpu.memory_space<vmem>>, vector<1x1x16x128xf32>
    %1 = vector.shape_cast %0 : vector<1x1x16x128xf32> to vector<16x128xf32>
    %c0_2 = arith.constant 0 : index
    %c0_3 = arith.constant 0 : index
    %2 = vector.load %arg4[%c0_2, %c0_3] : memref<1x128xf32, #tpu.memory_space<vmem>>, vector<1x128xf32>
    %3 = vector.shape_cast %2 : vector<1x128xf32> to vector<1x128xf32>
    %4 = vector.broadcast %3 : vector<1x128xf32> to vector<16x128xf32>
    %c0_4 = arith.constant 0 : index
    %c0_5 = arith.constant 0 : index
    %c7 = arith.constant 7 : index
    %c0_6 = arith.constant 0 : index
    %5 = vector.load %arg2[%c0_4, %c0_5, %c7, %c0_6] : memref<1x1x32x128xf32, #tpu.memory_space<vmem>>, vector<1x1x16x128xf32>
    %6 = vector.shape_cast %5 : vector<1x1x16x128xf32> to vector<16x128xf32>
    %c0_7 = arith.constant 0 : index
    %c0_8 = arith.constant 0 : index
    %7 = vector.load %arg3[%c0_7, %c0_8] : memref<3x128xf32, #tpu.memory_space<vmem>>, vector<1x128xf32>
    %8 = vector.broadcast %7 : vector<1x128xf32> to vector<16x128xf32>
    %9 = arith.mulf %6, %8 : vector<16x128xf32>
    %10 = arith.addf %4, %9 : vector<16x128xf32>
    %c0_9 = arith.constant 0 : index
    %c0_10 = arith.constant 0 : index
    %c8_11 = arith.constant 8 : index
    %c0_12 = arith.constant 0 : index
    %11 = vector.load %arg2[%c0_9, %c0_10, %c8_11, %c0_12] : memref<1x1x32x128xf32, #tpu.memory_space<vmem>>, vector<1x1x16x128xf32>
    %12 = vector.shape_cast %11 : vector<1x1x16x128xf32> to vector<16x128xf32>
    %c1 = arith.constant 1 : index
    %c0_13 = arith.constant 0 : index
    %13 = vector.load %arg3[%c1, %c0_13] : memref<3x128xf32, #tpu.memory_space<vmem>>, vector<1x128xf32>
    %14 = vector.broadcast %13 : vector<1x128xf32> to vector<16x128xf32>
    %15 = arith.mulf %12, %14 : vector<16x128xf32>
    %16 = arith.addf %10, %15 : vector<16x128xf32>
    %c0_14 = arith.constant 0 : index
    %c0_15 = arith.constant 0 : index
    %c9 = arith.constant 9 : index
    %c0_16 = arith.constant 0 : index
    %17 = vector.load %arg2[%c0_14, %c0_15, %c9, %c0_16] : memref<1x1x32x128xf32, #tpu.memory_space<vmem>>, vector<1x1x16x128xf32>
    %18 = vector.shape_cast %17 : vector<1x1x16x128xf32> to vector<16x128xf32>
    %c2 = arith.constant 2 : index
    %c0_17 = arith.constant 0 : index
    %19 = vector.load %arg3[%c2, %c0_17] : memref<3x128xf32, #tpu.memory_space<vmem>>, vector<1x128xf32>
    %20 = vector.broadcast %19 : vector<1x128xf32> to vector<16x128xf32>
    %21 = arith.mulf %18, %20 : vector<16x128xf32>
    %22 = arith.addf %16, %21 : vector<16x128xf32>
    %cst = arith.constant dense<0.000000e+00> : vector<16xf32>
    %23 = vector.multi_reduction <add>, %22, %cst [1] : vector<16x128xf32> to vector<16xf32>
    %24 = vector.shape_cast %23 : vector<16xf32> to vector<16x1xf32>
    %cst_18 = arith.constant 1.250000e-01 : f32
    %25 = vector.broadcast %cst_18 : f32 to vector<16x1xf32>
    %26 = arith.mulf %24, %25 : vector<16x1xf32>
    %27 = vector.broadcast %26 : vector<16x1xf32> to vector<16x128xf32>
    %28 = arith.subf %22, %27 : vector<16x128xf32>
    %29 = tpu.iota {dimensions = array<i32: 1>} : vector<1x128xi32>
    %c8_i32 = arith.constant 8 : i32
    %30 = vector.broadcast %c8_i32 : i32 to vector<1x128xi32>
    %31 = arith.cmpi slt, %29, %30 : vector<1x128xi32>
    %cst_19 = arith.constant 0.000000e+00 : f32
    %32 = vector.shape_cast %31 : vector<1x128xi1> to vector<1x128xi1>
    %33 = vector.broadcast %32 : vector<1x128xi1> to vector<16x128xi1>
    %34 = vector.broadcast %cst_19 : f32 to vector<16x128xf32>
    %35 = arith.select %33, %28, %34 : vector<16x128xi1>, vector<16x128xf32>
    %36 = arith.mulf %35, %35 : vector<16x128xf32>
    %cst_20 = arith.constant dense<0.000000e+00> : vector<16xf32>
    %37 = vector.multi_reduction <add>, %36, %cst_20 [1] : vector<16x128xf32> to vector<16xf32>
    %38 = vector.shape_cast %37 : vector<16xf32> to vector<16x1xf32>
    %cst_21 = arith.constant 1.250000e-01 : f32
    %39 = vector.broadcast %cst_21 : f32 to vector<16x1xf32>
    %40 = arith.mulf %38, %39 : vector<16x1xf32>
    %cst_22 = arith.constant 9.99999997E-7 : f32
    %41 = vector.broadcast %cst_22 : f32 to vector<16x1xf32>
    %42 = arith.addf %40, %41 : vector<16x1xf32>
    %43 = math.rsqrt %42 : vector<16x1xf32>
    %44 = vector.broadcast %43 : vector<16x1xf32> to vector<16x128xf32>
    %45 = arith.mulf %35, %44 : vector<16x128xf32>
    %c0_23 = arith.constant 0 : index
    %c0_24 = arith.constant 0 : index
    %46 = vector.load %arg5[%c0_23, %c0_24] : memref<1x128xf32, #tpu.memory_space<vmem>>, vector<1x128xf32>
    %47 = vector.broadcast %46 : vector<1x128xf32> to vector<16x128xf32>
    %48 = arith.mulf %45, %47 : vector<16x128xf32>
    %c0_25 = arith.constant 0 : index
    %c0_26 = arith.constant 0 : index
    %49 = vector.load %arg6[%c0_25, %c0_26] : memref<1x128xf32, #tpu.memory_space<vmem>>, vector<1x128xf32>
    %50 = vector.broadcast %49 : vector<1x128xf32> to vector<16x128xf32>
    %51 = arith.addf %48, %50 : vector<16x128xf32>
    %52 = arith.truncf %51 : vector<16x128xf32> to vector<16x128xbf16>
    %c0_27 = arith.constant 0 : index
    %c0_28 = arith.constant 0 : index
    %53 = vector.load %arg7[%c0_27, %c0_28] : memref<128x128xbf16, #tpu.memory_space<vmem>>, vector<128x128xbf16>
    %cst_29 = arith.constant dense<0.000000e+00> : vector<16x128xf32>
    %54 = tpu.matmul %52, %53, %cst_29 {dimension_numbers = #tpu.dot_dimension_numbers<[1], [0], [0], [1], [0, 0, 1, 1], [], []>} : vector<16x128xbf16>, vector<128x128xbf16>, vector<16x128xf32> -> vector<16x128xf32>
    %c0_30 = arith.constant 0 : index
    %c0_31 = arith.constant 0 : index
    %55 = vector.load %arg8[%c0_30, %c0_31] : memref<1x128xf32, #tpu.memory_space<vmem>>, vector<1x128xf32>
    %56 = vector.broadcast %55 : vector<1x128xf32> to vector<16x128xf32>
    %57 = arith.addf %54, %56 : vector<16x128xf32>
    %cst_32 = arith.constant 5.000000e-01 : f32
    %58 = vector.broadcast %cst_32 : f32 to vector<16x128xf32>
    %59 = arith.mulf %58, %57 : vector<16x128xf32>
    %cst_33 = arith.constant 0.707106769 : f32
    %60 = vector.broadcast %cst_33 : f32 to vector<16x128xf32>
    %61 = arith.mulf %57, %60 : vector<16x128xf32>
    %62 = math.absf %61 : vector<16x128xf32>
    %cst_34 = arith.constant 0.327591091 : f32
    %63 = vector.broadcast %cst_34 : f32 to vector<16x128xf32>
    %64 = arith.mulf %63, %62 : vector<16x128xf32>
    %cst_35 = arith.constant 1.000000e+00 : f32
    %65 = vector.broadcast %cst_35 : f32 to vector<16x128xf32>
    %66 = arith.addf %65, %64 : vector<16x128xf32>
    %67 = tpu.reciprocal %66 {approx = true} : vector<16x128xf32> -> vector<16x128xf32>
    %cst_36 = arith.constant 1.06140542 : f32
    %68 = vector.broadcast %cst_36 : f32 to vector<16x128xf32>
    %69 = arith.mulf %68, %67 : vector<16x128xf32>
    %cst_37 = arith.constant -1.45315206 : f32
    %70 = vector.broadcast %cst_37 : f32 to vector<16x128xf32>
    %71 = arith.addf %69, %70 : vector<16x128xf32>
    %72 = arith.mulf %71, %67 : vector<16x128xf32>
    %cst_38 = arith.constant 1.42141378 : f32
    %73 = vector.broadcast %cst_38 : f32 to vector<16x128xf32>
    %74 = arith.addf %72, %73 : vector<16x128xf32>
    %75 = arith.mulf %74, %67 : vector<16x128xf32>
    %cst_39 = arith.constant -0.284496725 : f32
    %76 = vector.broadcast %cst_39 : f32 to vector<16x128xf32>
    %77 = arith.addf %75, %76 : vector<16x128xf32>
    %78 = arith.mulf %77, %67 : vector<16x128xf32>
    %cst_40 = arith.constant 0.254829586 : f32
    %79 = vector.broadcast %cst_40 : f32 to vector<16x128xf32>
    %80 = arith.addf %78, %79 : vector<16x128xf32>
    %81 = arith.mulf %80, %67 : vector<16x128xf32>
    %cst_41 = arith.constant 0.000000e+00 : f32
    %82 = vector.broadcast %cst_41 : f32 to vector<16x128xf32>
    %83 = arith.subf %82, %62 : vector<16x128xf32>
    %84 = arith.mulf %83, %62 : vector<16x128xf32>
    %85 = math.exp %84 : vector<16x128xf32>
    %86 = arith.mulf %81, %85 : vector<16x128xf32>
    %cst_42 = arith.constant 1.000000e+00 : f32
    %87 = vector.broadcast %cst_42 : f32 to vector<16x128xf32>
    %88 = arith.subf %87, %86 : vector<16x128xf32>
    %cst_43 = arith.constant 0.000000e+00 : f32
    %89 = vector.broadcast %cst_43 : f32 to vector<16x128xf32>
    %90 = arith.cmpf oge, %61, %89 : vector<16x128xf32>
    %cst_44 = arith.constant 0.000000e+00 : f32
    %91 = vector.broadcast %cst_44 : f32 to vector<16x128xf32>
    %92 = arith.subf %91, %88 : vector<16x128xf32>
    %93 = arith.select %90, %88, %92 : vector<16x128xi1>, vector<16x128xf32>
    %cst_45 = arith.constant 1.000000e+00 : f32
    %94 = vector.broadcast %cst_45 : f32 to vector<16x128xf32>
    %95 = arith.addf %94, %93 : vector<16x128xf32>
    %96 = arith.mulf %59, %95 : vector<16x128xf32>
    %97 = arith.truncf %96 : vector<16x128xf32> to vector<16x128xbf16>
    %c0_46 = arith.constant 0 : index
    %c0_47 = arith.constant 0 : index
    %98 = vector.load %arg9[%c0_46, %c0_47] : memref<128x128xbf16, #tpu.memory_space<vmem>>, vector<128x128xbf16>
    %cst_48 = arith.constant dense<0.000000e+00> : vector<16x128xf32>
    %99 = tpu.matmul %97, %98, %cst_48 {dimension_numbers = #tpu.dot_dimension_numbers<[1], [0], [0], [1], [0, 0, 1, 1], [], []>} : vector<16x128xbf16>, vector<128x128xbf16>, vector<16x128xf32> -> vector<16x128xf32>
    %c0_49 = arith.constant 0 : index
    %c0_50 = arith.constant 0 : index
    %100 = vector.load %arg10[%c0_49, %c0_50] : memref<1x128xf32, #tpu.memory_space<vmem>>, vector<1x128xf32>
    %101 = vector.broadcast %100 : vector<1x128xf32> to vector<16x128xf32>
    %102 = arith.addf %99, %101 : vector<16x128xf32>
    %103 = arith.addf %1, %102 : vector<16x128xf32>
    %c0_51 = arith.constant 0 : index
    %c0_52 = arith.constant 0 : index
    %c0_53 = arith.constant 0 : index
    %104 = vector.load %arg11[%c0_51, %c0_52, %c0_53] : memref<1x16x128xf32, #tpu.memory_space<vmem>>, vector<1x16x128xf32>
    %105 = vector.shape_cast %104 : vector<1x16x128xf32> to vector<16x128xf32>
    %106 = vector.shape_cast %103 : vector<16x128xf32> to vector<1x16x128xf32>
    tpu.vector_store %arg11[%c0_51, %c0_52, %c0_53], %106 {strides = array<i32>} : memref<1x16x128xf32, #tpu.memory_space<vmem>>, vector<1x16x128xf32>,
    return
  }
  func.func @transform_0(%arg0: i32, %arg1: i32) -> (i32, i32, i32, i32) {
    %c0_i32 = arith.constant 0 : i32
    %c0_i32_0 = arith.constant 0 : i32
    %c0_i32_1 = arith.constant 0 : i32
    return %arg0, %arg1, %c0_i32, %c0_i32_0 : i32, i32, i32, i32
  }
  func.func @transform_1(%arg0: i32, %arg1: i32) -> (i32, i32) {
    %c0_i32 = arith.constant 0 : i32
    %c0_i32_0 = arith.constant 0 : i32
    %c0_i32_1 = arith.constant 0 : i32
    return %c0_i32, %c0_i32_0 : i32, i32
  }
  func.func @transform_2(%arg0: i32, %arg1: i32) -> (i32, i32) {
    %c0_i32 = arith.constant 0 : i32
    %c0_i32_0 = arith.constant 0 : i32
    %c0_i32_1 = arith.constant 0 : i32
    return %c0_i32, %c0_i32_0 : i32, i32
  }
  func.func @transform_3(%arg0: i32, %arg1: i32) -> (i32, i32) {
    %c0_i32 = arith.constant 0 : i32
    %c0_i32_0 = arith.constant 0 : i32
    %c0_i32_1 = arith.constant 0 : i32
    return %c0_i32, %c0_i32_0 : i32, i32
  }
  func.func @transform_4(%arg0: i32, %arg1: i32) -> (i32, i32) {
    %c0_i32 = arith.constant 0 : i32
    %c0_i32_0 = arith.constant 0 : i32
    %c0_i32_1 = arith.constant 0 : i32
    return %c0_i32, %c0_i32_0 : i32, i32
  }
  func.func @transform_5(%arg0: i32, %arg1: i32) -> (i32, i32) {
    %c0_i32 = arith.constant 0 : i32
    %c0_i32_0 = arith.constant 0 : i32
    %c0_i32_1 = arith.constant 0 : i32
    return %c0_i32, %c0_i32_0 : i32, i32
  }
  func.func @transform_6(%arg0: i32, %arg1: i32) -> (i32, i32) {
    %c0_i32 = arith.constant 0 : i32
    %c0_i32_0 = arith.constant 0 : i32
    %c0_i32_1 = arith.constant 0 : i32
    return %c0_i32, %c0_i32_0 : i32, i32
  }
  func.func @transform_7(%arg0: i32, %arg1: i32) -> (i32, i32) {
    %c0_i32 = arith.constant 0 : i32
    %c0_i32_0 = arith.constant 0 : i32
    %c0_i32_1 = arith.constant 0 : i32
    return %c0_i32, %c0_i32_0 : i32, i32
  }
  func.func @transform_8(%arg0: i32, %arg1: i32) -> (i32, i32) {
    %c0_i32 = arith.constant 0 : i32
    %c0_i32_0 = arith.constant 0 : i32
    %c0_i32_1 = arith.constant 0 : i32
    return %c0_i32, %c0_i32_0 : i32, i32
  }
  func.func @transform_9(%arg0: i32, %arg1: i32) -> (i32, i32, i32) {
    %c0_i32 = arith.constant 0 : i32
    %c0_i32_0 = arith.constant 0 : i32
    return %arg0, %arg1, %c0_i32 : i32, i32, i32
  }
}

module attributes {stable_mosaic.version = 11 : i64} {
  func.func @convnext_kernel(%arg0: i32, %arg1: i32, %arg2: memref<1x1x32x128xf32, #tpu.memory_space<vmem>>, %arg3: memref<3x128xf32, #tpu.memory_space<vmem>>, %arg4: memref<1x128xf32, #tpu.memory_space<vmem>>, %arg5: memref<1x128xf32, #tpu.memory_space<vmem>>, %arg6: memref<1x128xf32, #tpu.memory_space<vmem>>, %arg7: memref<128x128xbf16, #tpu.memory_space<vmem>>, %arg8: memref<1x128xf32, #tpu.memory_space<vmem>>, %arg9: memref<128x128xbf16, #tpu.memory_space<vmem>>, %arg10: memref<1x128xf32, #tpu.memory_space<vmem>>, %arg11: memref<1x16x128xf32, #tpu.memory_space<vmem>>) attributes {dimension_semantics = [#tpu.dimension_semantics<parallel>, #tpu.dimension_semantics<parallel>], iteration_bounds = array<i64: 2, 2>, scalar_prefetch = 0 : i64, scratch_operands = 0 : i64, tpu.core_type = #tpu.core_type<tc>, window_params = [{transform_indices = @transform_0, window_bounds = array<i64: 1, 1, 32, 128>}, {pipeline_mode = #tpu.pipeline_mode<synchronous>, transform_indices = @transform_1, window_bounds = array<i64: 3, 128>}, {pipeline_mode = #tpu.pipeline_mode<synchronous>, transform_indices = @transform_2, window_bounds = array<i64: 1, 128>}, {pipeline_mode = #tpu.pipeline_mode<synchronous>, transform_indices = @transform_3, window_bounds = array<i64: 1, 128>}, {pipeline_mode = #tpu.pipeline_mode<synchronous>, transform_indices = @transform_4, window_bounds = array<i64: 1, 128>}, {pipeline_mode = #tpu.pipeline_mode<synchronous>, transform_indices = @transform_5, window_bounds = array<i64: 128, 128>}, {pipeline_mode = #tpu.pipeline_mode<synchronous>, transform_indices = @transform_6, window_bounds = array<i64: 1, 128>}, {pipeline_mode = #tpu.pipeline_mode<synchronous>, transform_indices = @transform_7, window_bounds = array<i64: 128, 128>}, {pipeline_mode = #tpu.pipeline_mode<synchronous>, transform_indices = @transform_8, window_bounds = array<i64: 1, 128>}, {transform_indices = @transform_9, window_bounds = array<i64: 1, 16, 128>}]} {
    %c0 = arith.constant 0 : index
    %c0_0 = arith.constant 0 : index
    %c8 = arith.constant 8 : index
    %c0_1 = arith.constant 0 : index
    %0 = vector.load %arg2[%c0, %c0_0, %c8, %c0_1] : memref<1x1x32x128xf32, #tpu.memory_space<vmem>>, vector<1x1x16x128xf32>
    %1 = vector.shape_cast %0 : vector<1x1x16x128xf32> to vector<16x128xf32>
    %c0_2 = arith.constant 0 : index
    %c0_3 = arith.constant 0 : index
    %2 = vector.load %arg4[%c0_2, %c0_3] : memref<1x128xf32, #tpu.memory_space<vmem>>, vector<1x128xf32>
    %3 = vector.shape_cast %2 : vector<1x128xf32> to vector<1x128xf32>
    %4 = vector.broadcast %3 : vector<1x128xf32> to vector<16x128xf32>
    %c0_4 = arith.constant 0 : index
    %c0_5 = arith.constant 0 : index
    %c7 = arith.constant 7 : index
    %c0_6 = arith.constant 0 : index
    %5 = vector.load %arg2[%c0_4, %c0_5, %c7, %c0_6] : memref<1x1x32x128xf32, #tpu.memory_space<vmem>>, vector<1x1x16x128xf32>
    %6 = vector.shape_cast %5 : vector<1x1x16x128xf32> to vector<16x128xf32>
    %c0_7 = arith.constant 0 : index
    %c0_8 = arith.constant 0 : index
    %7 = vector.load %arg3[%c0_7, %c0_8] : memref<3x128xf32, #tpu.memory_space<vmem>>, vector<1x128xf32>
    %8 = vector.broadcast %7 : vector<1x128xf32> to vector<16x128xf32>
    %9 = arith.mulf %6, %8 : vector<16x128xf32>
    %10 = arith.addf %4, %9 : vector<16x128xf32>
    %c0_9 = arith.constant 0 : index
    %c0_10 = arith.constant 0 : index
    %c8_11 = arith.constant 8 : index
    %c0_12 = arith.constant 0 : index
    %11 = vector.load %arg2[%c0_9, %c0_10, %c8_11, %c0_12] : memref<1x1x32x128xf32, #tpu.memory_space<vmem>>, vector<1x1x16x128xf32>
    %12 = vector.shape_cast %11 : vector<1x1x16x128xf32> to vector<16x128xf32>
    %c1 = arith.constant 1 : index
    %c0_13 = arith.constant 0 : index
    %13 = vector.load %arg3[%c1, %c0_13] : memref<3x128xf32, #tpu.memory_space<vmem>>, vector<1x128xf32>
    %14 = vector.broadcast %13 : vector<1x128xf32> to vector<16x128xf32>
    %15 = arith.mulf %12, %14 : vector<16x128xf32>
    %16 = arith.addf %10, %15 : vector<16x128xf32>
    %c0_14 = arith.constant 0 : index
    %c0_15 = arith.constant 0 : index
    %c9 = arith.constant 9 : index
    %c0_16 = arith.constant 0 : index
    %17 = vector.load %arg2[%c0_14, %c0_15, %c9, %c0_16] : memref<1x1x32x128xf32, #tpu.memory_space<vmem>>, vector<1x1x16x128xf32>
    %18 = vector.shape_cast %17 : vector<1x1x16x128xf32> to vector<16x128xf32>
    %c2 = arith.constant 2 : index
    %c0_17 = arith.constant 0 : index
    %19 = vector.load %arg3[%c2, %c0_17] : memref<3x128xf32, #tpu.memory_space<vmem>>, vector<1x128xf32>
    %20 = vector.broadcast %19 : vector<1x128xf32> to vector<16x128xf32>
    %21 = arith.mulf %18, %20 : vector<16x128xf32>
    %22 = arith.addf %16, %21 : vector<16x128xf32>
    %cst = arith.constant dense<0.000000e+00> : vector<16xf32>
    %23 = vector.multi_reduction <add>, %22, %cst [1] : vector<16x128xf32> to vector<16xf32>
    %24 = vector.shape_cast %23 : vector<16xf32> to vector<16x1xf32>
    %cst_18 = arith.constant 1.250000e-01 : f32
    %25 = vector.broadcast %cst_18 : f32 to vector<16x1xf32>
    %26 = arith.mulf %24, %25 : vector<16x1xf32>
    %27 = vector.broadcast %26 : vector<16x1xf32> to vector<16x128xf32>
    %28 = arith.subf %22, %27 : vector<16x128xf32>
    %29 = tpu.iota {dimensions = array<i32: 1>} : vector<1x128xi32>
    %c8_i32 = arith.constant 8 : i32
    %30 = vector.broadcast %c8_i32 : i32 to vector<1x128xi32>
    %31 = arith.cmpi slt, %29, %30 : vector<1x128xi32>
    %cst_19 = arith.constant 0.000000e+00 : f32
    %32 = vector.shape_cast %31 : vector<1x128xi1> to vector<1x128xi1>
    %33 = vector.broadcast %32 : vector<1x128xi1> to vector<16x128xi1>
    %34 = vector.broadcast %cst_19 : f32 to vector<16x128xf32>
    %35 = arith.select %33, %28, %34 : vector<16x128xi1>, vector<16x128xf32>
    %36 = arith.mulf %35, %35 : vector<16x128xf32>
    %cst_20 = arith.constant dense<0.000000e+00> : vector<16xf32>
    %37 = vector.multi_reduction <add>, %36, %cst_20 [1] : vector<16x128xf32> to vector<16xf32>
    %38 = vector.shape_cast %37 : vector<16xf32> to vector<16x1xf32>
    %cst_21 = arith.constant 1.250000e-01 : f32
    %39 = vector.broadcast %cst_21 : f32 to vector<16x1xf32>
    %40 = arith.mulf %38, %39 : vector<16x1xf32>
    %cst_22 = arith.constant 9.99999997E-7 : f32
    %41 = vector.broadcast %cst_22 : f32 to vector<16x1xf32>
    %42 = arith.addf %40, %41 : vector<16x1xf32>
    %43 = math.rsqrt %42 : vector<16x1xf32>
    %44 = vector.broadcast %43 : vector<16x1xf32> to vector<16x128xf32>
    %45 = arith.mulf %35, %44 : vector<16x128xf32>
    %c0_23 = arith.constant 0 : index
    %c0_24 = arith.constant 0 : index
    %46 = vector.load %arg5[%c0_23, %c0_24] : memref<1x128xf32, #tpu.memory_space<vmem>>, vector<1x128xf32>
    %47 = vector.broadcast %46 : vector<1x128xf32> to vector<16x128xf32>
    %48 = arith.mulf %45, %47 : vector<16x128xf32>
    %c0_25 = arith.constant 0 : index
    %c0_26 = arith.constant 0 : index
    %49 = vector.load %arg6[%c0_25, %c0_26] : memref<1x128xf32, #tpu.memory_space<vmem>>, vector<1x128xf32>
    %50 = vector.broadcast %49 : vector<1x128xf32> to vector<16x128xf32>
    %51 = arith.addf %48, %50 : vector<16x128xf32>
    %52 = arith.truncf %51 : vector<16x128xf32> to vector<16x128xbf16>
    %c0_27 = arith.constant 0 : index
    %c0_28 = arith.constant 0 : index
    %53 = vector.load %arg7[%c0_27, %c0_28] : memref<128x128xbf16, #tpu.memory_space<vmem>>, vector<128x128xbf16>
    %cst_29 = arith.constant dense<0.000000e+00> : vector<16x128xf32>
    %54 = tpu.matmul %52, %53, %cst_29 {dimension_numbers = #tpu.dot_dimension_numbers<[1], [0], [0], [1], [0, 0, 1, 1], [], []>} : vector<16x128xbf16>, vector<128x128xbf16>, vector<16x128xf32> -> vector<16x128xf32>
    %c0_30 = arith.constant 0 : index
    %c0_31 = arith.constant 0 : index
    %55 = vector.load %arg8[%c0_30, %c0_31] : memref<1x128xf32, #tpu.memory_space<vmem>>, vector<1x128xf32>
    %56 = vector.broadcast %55 : vector<1x128xf32> to vector<16x128xf32>
    %57 = arith.addf %54, %56 : vector<16x128xf32>
    %cst_32 = arith.constant 5.000000e-01 : f32
    %58 = vector.broadcast %cst_32 : f32 to vector<16x128xf32>
    %59 = arith.mulf %58, %57 : vector<16x128xf32>
    %cst_33 = arith.constant 0.707106769 : f32
    %60 = vector.broadcast %cst_33 : f32 to vector<16x128xf32>
    %61 = arith.mulf %57, %60 : vector<16x128xf32>
    %62 = math.absf %61 : vector<16x128xf32>
    %cst_34 = arith.constant 0.327591091 : f32
    %63 = vector.broadcast %cst_34 : f32 to vector<16x128xf32>
    %64 = arith.mulf %63, %62 : vector<16x128xf32>
    %cst_35 = arith.constant 1.000000e+00 : f32
    %65 = vector.broadcast %cst_35 : f32 to vector<16x128xf32>
    %66 = arith.addf %65, %64 : vector<16x128xf32>
    %67 = tpu.reciprocal %66 {approx = true} : vector<16x128xf32> -> vector<16x128xf32>
    %cst_36 = arith.constant 1.06140542 : f32
    %68 = vector.broadcast %cst_36 : f32 to vector<16x128xf32>
    %69 = arith.mulf %68, %67 : vector<16x128xf32>
    %cst_37 = arith.constant -1.45315206 : f32
    %70 = vector.broadcast %cst_37 : f32 to vector<16x128xf32>
    %71 = arith.addf %69, %70 : vector<16x128xf32>
    %72 = arith.mulf %71, %67 : vector<16x128xf32>
    %cst_38 = arith.constant 1.42141378 : f32
    %73 = vector.broadcast %cst_38 : f32 to vector<16x128xf32>
    %74 = arith.addf %72, %73 : vector<16x128xf32>
    %75 = arith.mulf %74, %67 : vector<16x128xf32>
    %cst_39 = arith.constant -0.284496725 : f32
    %76 = vector.broadcast %cst_39 : f32 to vector<16x128xf32>
    %77 = arith.addf %75, %76 : vector<16x128xf32>
    %78 = arith.mulf %77, %67 : vector<16x128xf32>
    %cst_40 = arith.constant 0.254829586 : f32
    %79 = vector.broadcast %cst_40 : f32 to vector<16x128xf32>
    %80 = arith.addf %78, %79 : vector<16x128xf32>
    %81 = arith.mulf %80, %67 : vector<16x128xf32>
    %cst_41 = arith.constant 0.000000e+00 : f32
    %82 = vector.broadcast %cst_41 : f32 to vector<16x128xf32>
    %83 = arith.subf %82, %62 : vector<16x128xf32>
    %84 = arith.mulf %83, %62 : vector<16x128xf32>
    %85 = math.exp %84 : vector<16x128xf32>
    %86 = arith.mulf %81, %85 : vector<16x128xf32>
    %cst_42 = arith.constant 1.000000e+00 : f32
    %87 = vector.broadcast %cst_42 : f32 to vector<16x128xf32>
    %88 = arith.subf %87, %86 : vector<16x128xf32>
    %cst_43 = arith.constant 0.000000e+00 : f32
    %89 = vector.broadcast %cst_43 : f32 to vector<16x128xf32>
    %90 = arith.cmpf oge, %61, %89 : vector<16x128xf32>
    %cst_44 = arith.constant 0.000000e+00 : f32
    %91 = vector.broadcast %cst_44 : f32 to vector<16x128xf32>
    %92 = arith.subf %91, %88 : vector<16x128xf32>
    %93 = arith.select %90, %88, %92 : vector<16x128xi1>, vector<16x128xf32>
    %cst_45 = arith.constant 1.000000e+00 : f32
    %94 = vector.broadcast %cst_45 : f32 to vector<16x128xf32>
    %95 = arith.addf %94, %93 : vector<16x128xf32>
    %96 = arith.mulf %59, %95 : vector<16x128xf32>
    %97 = arith.truncf %96 : vector<16x128xf32> to vector<16x128xbf16>
    %c0_46 = arith.constant 0 : index
    %c0_47 = arith.constant 0 : index
    %98 = vector.load %arg9[%c0_46, %c0_47] : memref<128x128xbf16, #tpu.memory_space<vmem>>, vector<128x128xbf16>
    %cst_48 = arith.constant dense<0.000000e+00> : vector<16x128xf32>
    %99 = tpu.matmul %97, %98, %cst_48 {dimension_numbers = #tpu.dot_dimension_numbers<[1], [0], [0], [1], [0, 0, 1, 1], [], []>} : vector<16x128xbf16>, vector<128x128xbf16>, vector<16x128xf32> -> vector<16x128xf32>
    %c0_49 = arith.constant 0 : index
    %c0_50 = arith.constant 0 : index
    %100 = vector.load %arg10[%c0_49, %c0_50] : memref<1x128xf32, #tpu.memory_space<vmem>>, vector<1x128xf32>
    %101 = vector.broadcast %100 : vector<1x128xf32> to vector<16x128xf32>
    %102 = arith.addf %99, %101 : vector<16x128xf32>
    %103 = arith.addf %1, %102 : vector<16x128xf32>
    %c0_51 = arith.constant 0 : index
    %c0_52 = arith.constant 0 : index
    %c0_53 = arith.constant 0 : index
    %104 = vector.load %arg11[%c0_51, %c0_52, %c0_53] : memref<1x16x128xf32, #tpu.memory_space<vmem>>, vector<1x16x128xf32>
    %105 = vector.shape_cast %104 : vector<1x16x128xf32> to vector<16x128xf32>
    %106 = vector.shape_cast %103 : vector<16x128xf32> to vector<1x16x128xf32>
    tpu.vector_store %arg11[%c0_51, %c0_52, %c0_53], %106 {strides = array<i32>} : memref<1x16x128xf32, #tpu.memory_space<vmem>>, vector<1x16x128xf32>,
    return
  }
  func.func @transform_0(%arg0: i32, %arg1: i32) -> (i32, i32, i32, i32) {
    %c0_i32 = arith.constant 0 : i32
    %c0_i32_0 = arith.constant 0 : i32
    %c0_i32_1 = arith.constant 0 : i32
    return %arg0, %arg1, %c0_i32, %c0_i32_0 : i32, i32, i32, i32
  }
  func.func @transform_1(%arg0: i32, %arg1: i32) -> (i32, i32) {
    %c0_i32 = arith.constant 0 : i32
    %c0_i32_0 = arith.constant 0 : i32
    %c0_i32_1 = arith.constant 0 : i32
    return %c0_i32, %c0_i32_0 : i32, i32
  }
  func.func @transform_2(%arg0: i32, %arg1: i32) -> (i32, i32) {
    %c0_i32 = arith.constant 0 : i32
    %c0_i32_0 = arith.constant 0 : i32
    %c0_i32_1 = arith.constant 0 : i32
    return %c0_i32, %c0_i32_0 : i32, i32
  }
  func.func @transform_3(%arg0: i32, %arg1: i32) -> (i32, i32) {
    %c0_i32 = arith.constant 0 : i32
    %c0_i32_0 = arith.constant 0 : i32
    %c0_i32_1 = arith.constant 0 : i32
    return %c0_i32, %c0_i32_0 : i32, i32
  }
  func.func @transform_4(%arg0: i32, %arg1: i32) -> (i32, i32) {
    %c0_i32 = arith.constant 0 : i32
    %c0_i32_0 = arith.constant 0 : i32
    %c0_i32_1 = arith.constant 0 : i32
    return %c0_i32, %c0_i32_0 : i32, i32
  }
  func.func @transform_5(%arg0: i32, %arg1: i32) -> (i32, i32) {
    %c0_i32 = arith.constant 0 : i32
    %c0_i32_0 = arith.constant 0 : i32
    %c0_i32_1 = arith.constant 0 : i32
    return %c0_i32, %c0_i32_0 : i32, i32
  }
  func.func @transform_6(%arg0: i32, %arg1: i32) -> (i32, i32) {
    %c0_i32 = arith.constant 0 : i32
    %c0_i32_0 = arith.constant 0 : i32
    %c0_i32_1 = arith.constant 0 : i32
    return %c0_i32, %c0_i32_0 : i32, i32
  }
  func.func @transform_7(%arg0: i32, %arg1: i32) -> (i32, i32) {
    %c0_i32 = arith.constant 0 : i32
    %c0_i32_0 = arith.constant 0 : i32
    %c0_i32_1 = arith.constant 0 : i32
    return %c0_i32, %c0_i32_0 : i32, i32
  }
  func.func @transform_8(%arg0: i32, %arg1: i32) -> (i32, i32) {
    %c0_i32 = arith.constant 0 : i32
    %c0_i32_0 = arith.constant 0 : i32
    %c0_i32_1 = arith.constant 0 : i32
    return %c0_i32, %c0_i32_0 : i32, i32
  }
  func.func @transform_9(%arg0: i32, %arg1: i32) -> (i32, i32, i32) {
    %c0_i32 = arith.constant 0 : i32
    %c0_i32_0 = arith.constant 0 : i32
    return %arg0, %arg1, %c0_i32 : i32, i32, i32
  }
}

</mosaic_0001>

<bundles_post_ra>
// kernel: tpu_custom_call.1
= control target key start
LH: loop header
LB: loop body
LE: loop exit
PB: predicated region body
PF: predicated region fallthrough
CT: control target
= control target key end

     0   :  { %s1712_s0 = inlined_call_operand.hbm [shape: f32[2,2,32,128], index: 0, kind: input, shape index: {}]   ;;  %s1713_s1 = inlined_call_operand.hbm [shape: f32[3,128], index: 1, kind: input, shape index: {}]   ;;  %s1714_s2 = inlined_call_operand.vmem [shape: f32[1,128], index: 2, kind: input, shape index: {}]   ;;  %s1715_s3 = inlined_call_operand.vmem [shape: f32[1,128], index: 3, kind: input, shape index: {}]   ;;  %s1716_s4 = inlined_call_operand.vmem [shape: f32[1,128], index: 4, kind: input, shape index: {}]   ;;  %s1717_s5 = inlined_call_operand.hbm [shape: bf16[128,128], index: 5, kind: input, shape index: {}]   ;;  %s1718_s6 = inlined_call_operand.vmem [shape: f32[1,128], index: 6, kind: input, shape index: {}]   ;;  %s1719_s7 = inlined_call_operand.hbm [shape: bf16[128,128], index: 7, kind: input, shape index: {}]   ;;  %s1720_s8 = inlined_call_operand.vmem [shape: f32[1,128], index: 8, kind: input, shape index: {}]   ;;  %s1721_s9 = inlined_call_operand.hbm [shape: f32[2,32,128], index: 9, kind: output, shape index: {}]  }
   0x1   :  { %1733 = sst [smem:[#allocation21_spill]] %s1713_s1 }
   0x2   :  { %1734 = sst [smem:[#allocation22_spill]] %s1717_s5 }
   0x3   :  { %1735 = sst [smem:[#allocation23_spill]] %s1719_s7 }
   0x4   :  { %1736 = sst [smem:[#allocation24_spill]] %s1720_s8 }
   0x5   :  { %1737 = sst [smem:[#allocation25_spill]] %s1721_s9 }
   0x6   :  { %14 = vsyncpa [#allocation3], 0 }
   0x7   :  { %16 = vsyncpa [#allocation3 + $0x1], 0 }
   0x8   :  { %17 = vsyncpa [#allocation6], 0 }
   0x9   :  { %18 = vsyncpa [#allocation9], 0 }
   0xa   :  { %19 = vsyncpa [#allocation4], 0 }
   0xb   :  { %21 = vsyncpa [#allocation4 + $0x1], 0  ;;  %s1442_s30 = smov 0   ;;  %s1444_s10 = smov 0  }
   0xc   :  { %s1446_s11 = smov 0   ;;  %s1448_s12 = smov 0  }
   0xd   :  { %s1450_s13 = smov 0   ;;  %s1452_s14 = smov 0  }
   0xe   :  { %s1454_s15 = smov 0   ;;  %s1456_s16 = smov 0  }
   0xf LB: > { %1738 = sst [smem:[#allocation15_spill]] %s1349_s30  ;;  %s917_s17 = sadd.s32 4294967295, %s1377_s16   ;;  %s1377_s16 = sphi %s1456_s16, %s27_s16   ;;  %s1373_s15 = sphi %s1454_s15, %s1774_s15   ;;  %s1369_s14 = sphi %s1452_s14, %s1769_s14   ;;  %s1365_s13 = sphi %s1450_s13, %s1773_s13   ;;  %s1361_s12 = sphi %s1448_s12, %s1768_s12   ;;  %s1357_s11 = sphi %s1446_s11, %s1772_s11   ;;  %s1353_s10 = sphi %s1444_s10, %s1771_s10   ;;  %s1349_s30 = sphi %s1442_s30, %s1770_s30  }
  0x10   : > { %1739 = sst [smem:[#allocation16_spill]] %s1365_s13  ;;  %s918_s18 = sadd.s32 4294967294, %s1377_s16  }
  0x11   : > { %1740 = sst [smem:[#allocation17_spill]] %s1369_s14  ;;  %p61_p0 = scmp.ne.s32.totalorder %s1353_s10, %s1349_s30 }
  0x12   : > { %p1486_p1 = scmp.eq.s32.totalorder %s917_s17, 0  ;;  %p1490_p2 = scmp.eq.s32.totalorder %s917_s17, 3 }
  0x13   : > { %p261_p3 = scmp.eq.s32.totalorder %s918_s18, 3  ;;  %p919_p5 = scmp.ge.s32.totalorder %s1377_s16, 1 }
  0x14   : > { %s1741_s19 = scalar_select %p1486_p1, 1, 0 }
  0x15   : > { %s1742_s20 = scalar_select %p1490_p2, 1, 0 }
  0x16   : > { %p1496_p4 = por %p1486_p1, %p61_p0  ;;  %p1501_p6 = por %p261_p3, %p61_p0 }
  0x17   : > { %p268_p7 = scmp.lt.s32.totalorder %s1377_s16, 5  ;;  %s1379_s24 = smov [#allocation5]  }
  0x18   : > { %s1743_s21 = scalar_select %p1496_p4, 1, 0 }
  0x19   : > { %s1744_s22 = scalar_select %p1501_p6, 1, 0 }
  0x1a   : > { %p1506_p8 = pnand %p919_p5, %p268_p7  ;;  %s281_s25 = sshll.u32 %s1379_s24, 4  ;;  %s282_s25 = int_to_ptr.vmem [resolvable:$true] %s281_s25 }
  0x1b   : > { %1745 = sst [smem:[#allocation18_spill]] %s1744_s22  ;;  %s1380_s26 = smov [#allocation7]  }
  0x1c   : > { %s1746_s23 = scalar_select %p1506_p8, 1, 0 }
  0x1d   : > { %p1038_p9 = pneg %p1506_p8  ;;  %s300_s27 = sshll.u32 %s1380_s26, 4  ;;  %s301_s27 = int_to_ptr.vmem [resolvable:$true] %s300_s27 }
  0x1e   : > { %s1381_s29 = smov [#allocation8]   ;;  %s1178_s18 = scalar_lea.vmem %s282_s25, 64 }
  0x1f   : > { %p1514_p10 = pnand %p1038_p9, %p1486_p1  ;;  %s316_s17 = sshll.u32 %s1381_s29, 4  ;;  %s317_s17 = int_to_ptr.vmem [resolvable:$true] %s316_s17 }
  0x20   : > { %p1179_p12 = scmp.ne.s32.totalorder %s282_s25, %s1178_s18  ;;  %p1186_p3 = scmp.lt.s32.totalorder %s282_s25, %s282_s25 }
  0x21   : > { %p1169_p11 = pneg %p1514_p10  ;;  %p1187_p5 = scmp.lt.s32.totalorder %s1178_s18, %s1178_s18 }
  0x23   : > { %p1181_p13 = pnand %p1179_p12, %p1169_p11  ;;  %p1188_p7 = por %p1187_p5, %p1186_p3 }
  0x25   : > { %p1182_p0 = pneg %p1181_p13 }
  0x27   : > { %p1189_p9 = pnand %p1188_p7, %p1182_p0 }
  0x29   : > { %1192 = shalt.err (!%p1189_p9)
}
  0x2a   : > { %s1748_s1 = sld [smem:[#allocation21_spill]]  ;;  %s1204_s29 = scalar_lea.vmem %s301_s27, 1024 }
  0x2b   : > { %p1205_p6 = scmp.ne.s32.totalorder %s301_s27, %s1204_s29  ;;  %p1212_p12 = scmp.lt.s32.totalorder %s301_s27, %s301_s27 }
  0x2c   : > { %p1213_p13 = scmp.lt.s32.totalorder %s1204_s29, %s1204_s29 }
  0x2d   : > { %p1207_p1 = pnand %p1205_p6, %p1169_p11 }
  0x2e   : > { %p1214_p8 = por %p1213_p13, %p1212_p12 }
  0x2f   : > { %p1208_p4 = pneg %p1207_p1 }
  0x30   : > { %1041 = dma.hbm_to_vmem [thread:$0]  (!%p1514_p10), %s1748_s1, 64, %s282_s25, [#allocation6]  }
  0x31   : > { %p1215_p2 = pnand %p1214_p8, %p1208_p4 }
  0x33   : > { %1218 = shalt.err (!%p1215_p2)
}
  0x34   : > { %s1382_s18 = smov 64   ;;  %s1383_s22 = smov 4  }
  0x35   : > { %s1749_s5 = sld [smem:[#allocation22_spill]]  ;;  %s1230_s25 = scalar_lea.vmem %s317_s17, 1024 }
  0x36   : > { %p1231_p0 = scmp.ne.s32.totalorder %s317_s17, %s1230_s25  ;;  %p1238_p3 = scmp.lt.s32.totalorder %s317_s17, %s317_s17 }
  0x37   : > { %p1239_p5 = scmp.lt.s32.totalorder %s1230_s25, %s1230_s25 }
  0x38   : > { %p1233_p1 = pnand %p1231_p0, %p1169_p11 }
  0x39   : > { %p1240_p4 = por %p1239_p5, %p1238_p3 }
  0x3a   : > { %p1234_p6 = pneg %p1233_p1 }
  0x3b   : > { %1044 = dma.hbm_to_vmem [thread:$0]  (!%p1514_p10), %s1749_s5, 1024, %s301_s27, [#allocation6], %s1382_s18, %s1382_s18, %s1383_s22  }
  0x3c   : > { %p1241_p2 = pnand %p1240_p4, %p1234_p6 }
  0x3e   : > { %1244 = shalt.err (!%p1241_p2)
}
  0x3f   : > { %s1750_s7 = sld [smem:[#allocation23_spill]]  ;;  %s36_s30 = sadd.s32 1, %s1369_s14 }
  0x40   : > { %p37_p8 = scmp.ge.s32.totalorder %s36_s30, 2  ;;  %s39_s27 = sadd.s32 1, %s1373_s15 }
  0x41   : > { %s48_s28 = sadd.s32 1, %s1357_s11  ;;  %p55_p11 = scmp.ne.s32.totalorder %s1357_s11, %s1353_s10 }
  0x42   : > { %s1776_s30 = smov (%p37_p8, %s36_s30), 0  ;;  %s1778_s27 = smov (!%p37_p8, %s39_s27), %s1373_s15 }
  0x43   : > { %1751 = sst [smem:[#allocation19_spill]] %s1776_s30  ;;  %s44_s24 = ssub.s32 %s1369_s14, %s1776_s30 }
  0x44   : > { %p56_p7 = scmp.eq.s32.totalorder %s1377_s16, 0  ;;  %p41_p9 = scmp.ge.s32.totalorder %s1778_s27, 2 }
  0x45   : > { %1047 = dma.hbm_to_vmem [thread:$0]  (!%p1514_p10), %s1750_s7, 1024, %s317_s17, [#allocation9], %s1382_s18, %s1382_s18, %s1383_s22  }
  0x46   : > { %p1752_p12 = scmp.ne.s32.totalorder %s1742_s20, 0  ;;  %p1561_p10 = por %p56_p7, %p55_p11 }
  0x47   : > { %p1059_p0 = scmp.lt.s32.totalorder %s1377_s16, 4  ;;  %s1780_s27 = smov (%p41_p9, %s1778_s27), 0 }
  0x48   : > { %p1557_p13 = por %p1752_p12, %p55_p11  ;;  %s333_s17 = sand.u32 1, %s1357_s11  }
  0x49   : > { %s925_s18 = sshll.u32 %s1369_s14, 2  ;;  %s43_s26 = ssub.s32 %s1373_s15, %s1780_s27 }
  0x4a   : > { %s1753_s25 = scalar_select %p1557_p13, 1, 0 }
  0x4b   : > { %s45_s29 = sor.u32 %s44_s24, %s43_s26  ;;  %s924_s1 = sshll.u32 %s333_s17, 5 }
  0x4c   : > { %1754 = sst [smem:[#allocation20_spill]] %s1753_s25  ;;  %p46_p1 = scmp.eq.s32.totalorder %s45_s29, 0 }
  0x4d   : > { %s926_s20 = sshll.u32 %s1373_s15, 3  ;;  %s337_s5 = scalar_lea.vmem [#allocation2], %s924_s1 }
  0x4e   : > { %s346_s7 = sshll.u32 %s337_s5, 4  ;;  %s343_s9 = sadd.s32 %s926_s20, %s925_s18  ;;  %s347_s7 = int_to_ptr.vmem [resolvable:$true] %s346_s7 }
  0x4f   : > { %s1574_s30 = scalar_select %p46_p1, %s1357_s11, %s48_s28  }
  0x50   : > { %s927_s25 = sshll.u32 %s343_s9, 7  ;;  %p1580_p6 = pnand %p1059_p0, %p1561_p10 }
  0x51   : > { %s345_s24 = scalar_lea.hbm %s1712_s0, %s927_s25  ;;  %s334_s26 = scalar_lea.sflag [#allocation3], %s333_s17 }
  0x52   : > { %p1247_p3 = pneg %p1580_p6  ;;  %s1258_s1 = scalar_lea.vmem %s347_s7, 512 }
  0x53   : > { %p1259_p5 = scmp.ne.s32.totalorder %s347_s7, %s1258_s1  ;;  %s1384_s5 = smov [#allocation2]  }
  0x54   : > { %s1263_s9 = sshll.u32 %s1384_s5, 4  ;;  %s1264_s9 = int_to_ptr.vmem [resolvable:$false] %s1263_s9 }
  0x55   : > { %p1261_p4 = pnand %p1259_p5, %p1247_p3  ;;  %s1265_s28 = scalar_lea.vmem %s1264_s9, 1024 }
  0x56   : > { %p1266_p8 = scmp.lt.s32.totalorder %s347_s7, %s1264_s9  ;;  %p1267_p11 = scmp.lt.s32.totalorder %s1265_s28, %s1258_s1 }
  0x57   : > { %p1262_p2 = pneg %p1261_p4 }
  0x58   : > { %p1268_p7 = por %p1267_p11, %p1266_p8 }
  0x5a   : > { %p1269_p9 = pnand %p1268_p7, %p1262_p2 }
  0x5c   : > { %1272 = shalt.err (!%p1269_p9)
}
  0x5d   : > { %s1385_s22 = smov 128   ;;  %s1386_s13 = smov 8  }
  0x5e   : > { %1051 = dma.hbm_to_vmem [thread:$0]  (!%p1580_p6), %s345_s24, 512, %s347_s7, %s334_s26, %s1385_s22, %s1385_s22, %s1386_s13  }
  0x5f   : > { %p1757_p12 = scmp.ne.s32.totalorder %s1746_s23, 0 }
  0x60   : > { %s1594_s14 = sand.u32 (!%p1757_p12), 1, %s1353_s10   ;;  %p1758_p10 = scmp.ne.s32.totalorder (!%p1757_p12), %s1743_s21, 0 }
  0x61   : > { %358 = sbr.rel (%p1757_p12) target bundleno = 898 (0x382), region = 56  ;;  %s929_s25 = sshll.u32 (!%p1757_p12), %s1594_s14, 5 }
  0x62   : > { %s361_s17 = scalar_lea.sflag (!%p1757_p12), [#allocation3], %s1594_s14  ;;  %s364_s18 = scalar_lea.vmem (!%p1757_p12), [#allocation2], %s929_s25 }
  0x66   : > { %1332 = dma.done.wait (%p1758_p10), %s361_s17, 512  }
  0x67   : > { %1334 = vsyncadd (%p1758_p10), %s361_s17, 4294966784  ;;  %p1759_p0 = scmp.ne.s32.totalorder %s1741_s19, 0 }
  0x69   : > { %1336 = dma.done.wait (%p1759_p0), [#allocation6], 1088  }
  0x6a   : > { %1338 = vsyncadd (%p1759_p0), [#allocation6], 4294966208 }
  0x6b   : > { %1340 = dma.done.wait (%p1759_p0), [#allocation9], 1024  }
  0x6c   : > { %1342 = vsyncadd (%p1759_p0), [#allocation9], 4294966272  ;;  %v1610_v0 = vld [vmem:[%s364_s18 + $0x8] sm:$0xff]  ;;  %v934_v1 = vld [vmem:[%s1714_s2] ss:$0 sm:$0xff]  ;;  %v1387_v23 = vmov 0.0   ;;  %v461_v24 = vlaneseq }
  0x6d   : > { %v422_v2 = vld [vmem:[%s364_s18 + $0x7] sm:$0xff]  ;;  %v935_v3 = vld [vmem:[#allocation5] ss:$0 sm:$0xff]  ;;  %v936_v4 = vld [vmem:[#allocation5 + $0x1] ss:$0 sm:$0xff]  ;;  %982 = vmatprep.subr.bf16.mxu0 %v1387_v23  ;;  %1002 = vmatprep.subr.bf16.mxu1 %v1387_v23  ;;  %vm1388_vm1 = vmmov 0  }
  0x6e   : > { %v442_v5 = vld [vmem:[%s364_s18 + $0x9] sm:$0xff]  ;;  %v429_v6 = vmul.f32 %v935_v3, %v422_v2  ;;  %v438_v7 = vmul.f32 %v936_v4, %v1610_v0  ;;  %v937_v8 = vld [vmem:[#allocation5 + $0x2] ss:$0 sm:$0xff]  ;;  %v443_v13 = vld [vmem:[%s364_s18 + $0x11] sm:$0xff]  ;;  %v462_v25 = vand.u32 127, %v461_v24  ;;  %998 = vmatprep.mubr.msk.bf16.mxu0 %vm1388_vm1, %v1387_v23  ;;  %1018 = vmatprep.mubr.msk.bf16.mxu1 %vm1388_vm1, %v1387_v23  ;;  %s1760_s26 = sld [smem:[#allocation16_spill]] }
  0x6f   : > { %v1616_v9 = vld [vmem:[%s364_s18 + $0x10] sm:$0xff]  ;;  %v449_v15 = vmul.f32 %v937_v8, %v442_v5  ;;  %v450_v18 = vmul.f32 %v937_v8, %v443_v13  ;;  %v1139_v22 = vld [vmem:[#allocation7 + $0x38] sm:$0xff]   ;;  %v1142_v38 = vld [vmem:[#allocation7 + $0x20] sm:$0xff]   ;;  %s959_s1 = sshll.u32 %s1361_s12, 1  ;;  %s933_s9 = sshll.u32 %s1594_s14, 4 }
  0x70   : > { %v423_v10 = vld [vmem:[%s364_s18 + $0xf] sm:$0xff]  ;;  %v439_v12 = vmul.f32 %v936_v4, %v1616_v9  ;;  %v431_v14 = vadd.f32 %v934_v1, %v429_v6  ;;  %983 = vmatpush3.bf16.msra.mxu0 %v1139_v22  ;;  %vm463_vm0 = vcmp.lt.s32.totalorder %v462_v25, 8  ;;  %v1143_v39 = vld [vmem:[#allocation7 + $0x18] sm:$0xff]   ;;  %v1146_v42 = vld [vmem:[#allocation7] sm:$0xff]   ;;  %s1761_s13 = sld [smem:[#allocation24_spill]]  ;;  %s410_s17 = scalar_lea.vmem [#allocation10], %s933_s9 }
  0x71   : > { %v430_v11 = vmul.f32 %v935_v3, %v423_v10  ;;  %984 = vmatprep.subr.bf16.mxu0 %v1387_v23  ;;  %v1140_v36 = vld [vmem:[#allocation7 + $0x30] sm:$0xff]   ;;  %v1141_v37 = vld [vmem:[#allocation7 + $0x28] sm:$0xff]   ;;  %v938_v51 = vld [vmem:[%s1715_s3] ss:$0 sm:$0xff]  ;;  %s798_s7 = sshll.u32 %s410_s17, 4  ;;  %s1763_s21 = sld [smem:[#allocation25_spill]]  ;;  %s1653_s7 = int_to_ptr.vmem [resolvable:$true] %s798_s7 }
  0x72   : > { %v440_v17 = vadd.f32 %v438_v7, %v431_v14  ;;  %v1144_v40 = vld [vmem:[#allocation7 + $0x10] sm:$0xff]   ;;  %v1145_v41 = vld [vmem:[#allocation7 + $0x8] sm:$0xff]   ;;  %v939_v55 = vld [vmem:[%s1716_s4] ss:$0 sm:$0xff]  ;;  %s783_s29 = scalar_lea.sflag [#allocation4], %s1594_s14  ;;  %s1273_s20 = scalar_lea.vmem %s1653_s7, 256 }
  0x73   : > { %v432_v16 = vadd.f32 %v934_v1, %v430_v11  ;;  %v1147_v60 = vld [vmem:[#allocation8 + $0x38] sm:$0xff]   ;;  %v1148_v61 = vld [vmem:[#allocation8 + $0x30] sm:$0xff]   ;;  %v1149_v62 = vld [vmem:[#allocation8 + $0x28] sm:$0xff]   ;;  %p1274_p1 = scmp.ne.s32.totalorder %s1653_s7, %s1273_s20  ;;  %s1389_s24 = smov [#allocation10]  }
  0x74   : > { %v451_v20 = vadd.f32 %v449_v15, %v440_v17  ;;  %985 = vmatpush3.bf16.msra.mxu0 %v1140_v36  ;;  %1003 = vmatpush3.bf16.msra.mxu1 %v1147_v60  ;;  %v1150_v63 = vld [vmem:[#allocation8 + $0x20] sm:$0xff]   ;;  %v1151_v1 = vld [vmem:[#allocation8 + $0x18] sm:$0xff]   ;;  %v1152_v2 = vld [vmem:[#allocation8 + $0x10] sm:$0xff]   ;;  %s960_s5 = sshll.u32 %s1760_s26, 2  ;;  %s1277_s26 = sshll.u32 %s1389_s24, 4  ;;  %s1278_s26 = int_to_ptr.vmem [resolvable:$false] %s1277_s26 }
  0x75   : > { %v441_v19 = vadd.f32 %v439_v12, %v432_v16  ;;  %986 = vmatprep.subr.bf16.mxu0 %v1387_v23  ;;  %1004 = vmatprep.subr.bf16.mxu1 %v1387_v23  ;;  %v1153_v3 = vld [vmem:[#allocation8 + $0x8] sm:$0xff]   ;;  %v1154_v4 = vld [vmem:[#allocation8] sm:$0xff]   ;;  %v940_v5 = vld [vmem:[%s1718_s6] ss:$0 sm:$0xff]  ;;  %s795_s25 = sadd.s32 %s960_s5, %s959_s1  ;;  %p1275_p6 = pnand %p1274_p1, %p1557_p13 }
  0x76   : > { %453 = vadd.xlane.f32.xlu0 %v451_v20  ;;  %s961_s8 = sshll.u32 %s795_s25, 7  ;;  %s1279_s1 = scalar_lea.vmem %s1278_s26, 512 }
  0x77   : > { %v452_v21 = vadd.f32 %v450_v18, %v441_v19  ;;  %s1658_s23 = scalar_lea.hbm %s1763_s21, %s961_s8  ;;  %p1276_p3 = pneg %p1275_p6 }
  0x78   : > { %987 = vmatpush3.bf16.msra.mxu0 %v1141_v37  ;;  %1005 = vmatpush3.bf16.msra.mxu1 %v1148_v61  ;;  %p1280_p5 = scmp.lt.s32.totalorder %s1653_s7, %s1278_s26  ;;  %p1281_p4 = scmp.lt.s32.totalorder %s1279_s1, %s1273_s20 }
  0x79   : > { %988 = vmatprep.subr.bf16.mxu0 %v1387_v23  ;;  %1006 = vmatprep.subr.bf16.mxu1 %v1387_v23 }
  0x7a   : > { %455 = vadd.xlane.f32.xlu0 %v452_v21  ;;  %p1282_p2 = por %p1281_p4, %p1280_p5 }
  0x7c   : > { %989 = vmatpush3.bf16.msra.mxu0 %v1142_v38  ;;  %1007 = vmatpush3.bf16.msra.mxu1 %v1149_v62  ;;  %p1283_p8 = pnand %p1282_p2, %p1276_p3 }
  0x7d   : > { %990 = vmatprep.subr.bf16.mxu0 %v1387_v23  ;;  %1008 = vmatprep.subr.bf16.mxu1 %v1387_v23 }
  0x80   : > { %991 = vmatpush3.bf16.msra.mxu0 %v1143_v39  ;;  %1009 = vmatpush3.bf16.msra.mxu1 %v1150_v63 }
  0x81   : > { %992 = vmatprep.subr.bf16.mxu0 %v1387_v23  ;;  %1010 = vmatprep.subr.bf16.mxu1 %v1387_v23 }
  0x84   : > { %993 = vmatpush3.bf16.msra.mxu0 %v1144_v40  ;;  %1011 = vmatpush3.bf16.msra.mxu1 %v1151_v1  ;;  %v949_v1 = vld [vmem:[%s1761_s13] ss:$0 sm:$0xff] }
  0x85   : > { %994 = vmatprep.subr.bf16.mxu0 %v1387_v23  ;;  %1012 = vmatprep.subr.bf16.mxu1 %v1387_v23 }
  0x88   : > { %995 = vmatpush3.bf16.msra.mxu0 %v1145_v41  ;;  %1013 = vmatpush3.bf16.msra.mxu1 %v1152_v2 }
  0x89   : > { %996 = vmatprep.subr.bf16.mxu0 %v1387_v23  ;;  %1014 = vmatprep.subr.bf16.mxu1 %v1387_v23 }
  0x8c   : > { %997 = vmatpush3.bf16.msra.mxu0 %v1146_v42  ;;  %1015 = vmatpush3.bf16.msra.mxu1 %v1153_v3 }
  0x8d   : > { %1016 = vmatprep.subr.bf16.mxu1 %v1387_v23 }
  0x90   : > { %1017 = vmatpush3.bf16.msra.mxu1 %v1154_v4 }
  0xff   : > { %v454_v26 = vpop.xlane.xlu0 %453 }
 0x100   : > { %v457_v27 = vmul.f32 0.125, %v454_v26 }
 0x102   : > { %v459_v28 = vsub.f32 %v451_v20, %v457_v27 }
 0x103   : > { %v456_v29 = vpop.xlane.xlu0 %455 }
 0x104   : > { %v458_v30 = vmul.f32 0.125, %v456_v29  ;;  %v466_v31 = vsel %vm463_vm0, %v459_v28, 0.0 }
 0x105   : > { %v468_v32 = vmul.f32 %v466_v31, %v466_v31 }
 0x106   : > { %v460_v33 = vsub.f32 %v452_v21, %v458_v30 }
 0x107   : > { %470 = vadd.xlane.f32.xlu1 %v468_v32 }
 0x108   : > { %v467_v34 = vsel %vm463_vm0, %v460_v33, 0.0 }
 0x109   : > { %v469_v35 = vmul.f32 %v467_v34, %v467_v34 }
 0x10b   : > { %472 = vadd.xlane.f32.xlu1 %v469_v35 }
 0x190   : > { %v471_v43 = vpop.xlane.xlu1 %470 }
 0x191   : > { %v474_v44 = vmul.f32 0.125, %v471_v43 }
 0x193   : > { %v476_v45 = vadd.f32 1e-06, %v474_v44 }
 0x194   : > { %v473_v46 = vpop.xlane.xlu1 %472 }
 0x195   : > { %1155 = vrsqrt.f32 %v476_v45  ;;  %v475_v47 = vmul.f32 0.125, %v473_v46 }
 0x197   : > { %v477_v48 = vadd.f32 1e-06, %v475_v47 }
 0x199   : > { %1157 = vrsqrt.f32 %v477_v48 }
 0x1a2   : > { %v1156_v49 = vpop.eup %1155 }
 0x1a3   : > { %v480_v50 = vmul.f32 %v1156_v49, %v466_v31 }
 0x1a5   : > { %v489_v54 = vmul.f32 %v938_v51, %v480_v50 }
 0x1a6   : > { %v1158_v52 = vpop.eup %1157 }
 0x1a7   : > { %v481_v53 = vmul.f32 %v1158_v52, %v467_v34  ;;  %v498_v57 = vadd.f32 %v939_v55, %v489_v54 }
 0x1a9   : > { %v490_v56 = vmul.f32 %v938_v51, %v481_v53 }
 0x1ab   : > { %v499_v58 = vadd.f32 %v939_v55, %v490_v56 }
 0x1ad   : > { %v500_v59 = vpack.c.bf16 %v499_v58, %v498_v57 }
 0x1af   : > { %999 = vmatmul.mubr.bf16.vlgmr.msra.gmra.mxu0 %v500_v59 }
 0x26f   : > { %v606_v6 = vpop.f32.mrf.mxu0 }
 0x270   : > { %v607_v7 = vadd.f32 %v940_v5, %v606_v6 }
 0x271   : > { %v1000_v8 = vpop.f32.mrf.mxu0 }
 0x272   : > { %v615_v10 = vmul.f32 0.70710677, %v607_v7  ;;  %v613_v58 = vmul.f32 0.5, %v607_v7 }
 0x273   : > { %v609_v11 = vpop.f32.mrf.mxu0 }
 0x274   : > { %v617_v12 = vand.u32 2147483647, %v615_v10  ;;  %v610_v13 = vadd.f32 %v940_v5, %v609_v11  ;;  %vm655_vm2 = vcmp.ge.f32.partialorder %v615_v10, 0.0 }
 0x275   : > { %v1001_v14 = vpop.f32.mrf.mxu0 }
 0x276   : > { %v619_v15 = vmul.f32 0.3275911, %v617_v12  ;;  %v616_v16 = vmul.f32 0.70710677, %v610_v13  ;;  %v643_v21 = vsub.f32 0.0, %v617_v12  ;;  %v614_v59 = vmul.f32 0.5, %v610_v13 }
 0x278   : > { %v621_v17 = vadd.f32 1.0, %v619_v15  ;;  %v618_v18 = vand.u32 2147483647, %v616_v16  ;;  %v645_v22 = vmul.f32 %v643_v21, %v617_v12  ;;  %vm656_vm3 = vcmp.ge.f32.partialorder %v616_v16, 0.0 }
 0x27a   : > { %1159 = vrcp.f32 %v621_v17  ;;  %v620_v19 = vmul.f32 0.3275911, %v618_v18  ;;  %v644_v23 = vsub.f32 0.0, %v618_v18  ;;  %v647_v26 = vmul.f32 1.442695, %v645_v22 }
 0x27c   : > { %v622_v20 = vadd.f32 1.0, %v620_v19  ;;  %v646_v27 = vmul.f32 %v644_v23, %v618_v18 }
 0x27e   : > { %1161 = vrcp.f32 %v622_v20  ;;  %v649_v32 = vmul.f32 1.442695, %v646_v27 }
 0x27f   : > { %1163 = vpow2.f32 %v647_v26 }
 0x280   : > { %1165 = vpow2.f32 %v649_v32 }
 0x287   : > { %v1160_v24 = vpop.eup %1159 }
 0x288   : > { %v625_v25 = vmul.f32 1.0614054, %v1160_v24 }
 0x28a   : > { %v627_v28 = vadd.f32 -1.4531521, %v625_v25 }
 0x28b   : > { %v1162_v29 = vpop.eup %1161 }
 0x28c   : > { %v629_v30 = vmul.f32 %v1160_v24, %v627_v28  ;;  %v626_v31 = vmul.f32 1.0614054, %v1162_v29  ;;  %v1164_v45 = vpop.eup %1163 }
 0x28d   : > { %v1166_v50 = vpop.eup %1165 }
 0x28e   : > { %v631_v33 = vadd.f32 1.4214138, %v629_v30  ;;  %v628_v34 = vadd.f32 -1.4531521, %v626_v31 }
 0x290   : > { %v633_v35 = vmul.f32 %v1160_v24, %v631_v33  ;;  %v630_v36 = vmul.f32 %v1162_v29, %v628_v34 }
 0x292   : > { %v635_v37 = vadd.f32 -0.28449672, %v633_v35  ;;  %v632_v38 = vadd.f32 1.4214138, %v630_v36 }
 0x294   : > { %v637_v39 = vmul.f32 %v1160_v24, %v635_v37  ;;  %v634_v40 = vmul.f32 %v1162_v29, %v632_v38 }
 0x296   : > { %v639_v41 = vadd.f32 0.2548296, %v637_v39  ;;  %v636_v42 = vadd.f32 -0.28449672, %v634_v40 }
 0x298   : > { %v641_v43 = vmul.f32 %v1160_v24, %v639_v41  ;;  %v638_v44 = vmul.f32 %v1162_v29, %v636_v42 }
 0x29a   : > { %v651_v46 = vmul.f32 %v1164_v45, %v641_v43  ;;  %v640_v47 = vadd.f32 0.2548296, %v638_v44 }
 0x29c   : > { %v653_v48 = vsub.f32 1.0, %v651_v46  ;;  %v642_v49 = vmul.f32 %v1162_v29, %v640_v47 }
 0x29e   : > { %v657_v51 = vsub.f32 0.0, %v653_v48  ;;  %v652_v52 = vmul.f32 %v1166_v50, %v642_v49 }
 0x2a0   : > { %v659_v53 = vsel %vm655_vm2, %v653_v48, %v657_v51  ;;  %v654_v54 = vsub.f32 1.0, %v652_v52 }
 0x2a1   : > { %v661_v56 = vadd.f32 1.0, %v659_v53 }
 0x2a2   : > { %v658_v55 = vsub.f32 0.0, %v654_v54 }
 0x2a3   : > { %v663_v61 = vmul.f32 %v661_v56, %v613_v58 }
 0x2a4   : > { %v660_v57 = vsel %vm656_vm3, %v654_v54, %v658_v55 }
 0x2a5   : > { %v662_v60 = vadd.f32 1.0, %v660_v57 }
 0x2a7   : > { %v664_v62 = vmul.f32 %v662_v60, %v614_v59 }
 0x2a9   : > { %v665_v63 = vpack.c.bf16 %v664_v62, %v663_v61 }
 0x2ab   : > { %1019 = vmatmul.mubr.bf16.vlgmr.msra.gmra.mxu1 %v665_v63 }
 0x36b   : > { %v771_v2 = vpop.f32.mrf.mxu1 }
 0x36c   : > { %v772_v3 = vadd.f32 %v949_v1, %v771_v2 }
 0x36d   : > { %v1020_v4 = vpop.f32.mrf.mxu1 }
 0x36e   : > { %v778_v5 = vadd.f32 %v772_v3, %v1610_v0 }
 0x36f   : > { %v774_v6 = vpop.f32.mrf.mxu1 }
 0x370   : > { %780 = vst [vmem:[%s410_s17] sm:$0xff] %v778_v5  ;;  %v775_v7 = vadd.f32 %v949_v1, %v774_v6 }
 0x371   : > { %v1021_v8 = vpop.f32.mrf.mxu1 }
 0x372   : > { %v779_v10 = vadd.f32 %v775_v7, %v1616_v9 }
 0x374   : > { %781 = vst [vmem:[%s410_s17 + $0x8] sm:$0xff] %v779_v10 }
 0x375   : > { %1286 = shalt.err (!%p1283_p8)
}
 0x376   : > { %s1287_s5 = scalar_lea.hbm %s1658_s23, 256  ;;  %s1291_s22 = scalar_lea.hbm %s1763_s21, 1024 }
 0x377   : > { %p1288_p11 = scmp.ne.s32.totalorder %s1658_s23, %s1287_s5  ;;  %p1292_p12 = scmp.lt.s32.totalorder %s1658_s23, %s1763_s21 }
 0x378   : > { %p1293_p10 = scmp.lt.s32.totalorder %s1291_s22, %s1287_s5 }
 0x379   : > { %p1289_p7 = pnand %p1288_p11, %p1557_p13 }
 0x37a   : > { %p1294_p0 = por %p1293_p10, %p1292_p12 }
 0x37b   : > { %p1290_p9 = pneg %p1289_p7 }
 0x37d   : > { %p1295_p1 = pnand %p1294_p0, %p1290_p9 }
 0x37f   : > { %1298 = shalt.err (!%p1295_p1)
}
 0x380   : > { %s1390_s17 = smov 128   ;;  %s1391_s8 = smov 8  }
 0x381   : > { %1036 = dma.vmem_to_hbm [thread:$0]  (%p1557_p13), %s1653_s7, 256, %s1658_s23, %s783_s29, %s1390_s17, %s1390_s17, %s1391_s8  }
 0x382 PF: > { %s1764_s12 = sld [smem:[#allocation15_spill]]  ;;  %p1063_p6 = scmp.ge.s32.totalorder %s1377_s16, 2 }
 0x383   : > { %s1765_s19 = sld [smem:[#allocation18_spill]] }
 0x388   : > { %s813_s20 = sand.u32 1, %s1764_s12  }
 0x389   : > { %p1766_p3 = scmp.ne.s32.totalorder %s1765_s19, 0  ;;  %s814_s24 = scalar_lea.sflag [#allocation4], %s813_s20 }
 0x38b   : > { %p1053_p5 = pnand %p1063_p6, %p1766_p3 }
 0x38d   : > { %p1054_p4 = pneg %p1053_p5 }
 0x38f   : > { %1344 = dma.done.wait (%p1054_p4), %s814_s24, 256  }
 0x390   : > { %1346 = vsyncadd (%p1054_p4), %s814_s24, 4294967040  ;;  %s27_s16 = sadd.s32 1, %s1377_s16   ;;  %s1767_s18 = smov %s1574_s30 }
 0x391   : > { %p24_p2 = scmp.ge.s32.totalorder %s27_s16, 6   ;;  %s1768_s12 = sld [smem:[#allocation17_spill]] }
 0x392   : > { %s1769_s14 = sld [smem:[#allocation19_spill]]  ;;  %s1770_s30 = smov %s1353_s10 }
 0x393   : > { %s1771_s10 = smov %s1357_s11  ;;  %s1772_s11 = smov %s1767_s18 }
 0x394   : > { %s1773_s13 = smov %s1373_s15  ;;  %s1774_s15 = smov %s1780_s27 }
 0x395   :  { %26 = sbr.rel (!%p24_p2) target bundleno = 15 (0xf), region = 113 }
 0x39a   :  { %819 = vsyncpa [#allocation3], 1 }
 0x39b   :  { %821 = vsyncpa [#allocation3 + $0x1], 1 }
 0x39c   :  { %822 = vsyncpa [#allocation6], 1 }
 0x39d   :  { %823 = vsyncpa [#allocation9], 1 }
 0x39e   :  { %824 = vsyncpa [#allocation4], 1 }
 0x39f   :  { %826 = vsyncpa [#allocation4 + $0x1], 1 }

// kernel: tpu_custom_call.1
= control target key start
LH: loop header
LB: loop body
LE: loop exit
PB: predicated region body
PF: predicated region fallthrough
CT: control target
= control target key end

     0   :  { %s1712_s0 = inlined_call_operand.hbm [shape: f32[2,2,32,128], index: 0, kind: input, shape index: {}]   ;;  %s1713_s1 = inlined_call_operand.hbm [shape: f32[3,128], index: 1, kind: input, shape index: {}]   ;;  %s1714_s2 = inlined_call_operand.vmem [shape: f32[1,128], index: 2, kind: input, shape index: {}]   ;;  %s1715_s3 = inlined_call_operand.vmem [shape: f32[1,128], index: 3, kind: input, shape index: {}]   ;;  %s1716_s4 = inlined_call_operand.vmem [shape: f32[1,128], index: 4, kind: input, shape index: {}]   ;;  %s1717_s5 = inlined_call_operand.hbm [shape: bf16[128,128], index: 5, kind: input, shape index: {}]   ;;  %s1718_s6 = inlined_call_operand.vmem [shape: f32[1,128], index: 6, kind: input, shape index: {}]   ;;  %s1719_s7 = inlined_call_operand.hbm [shape: bf16[128,128], index: 7, kind: input, shape index: {}]   ;;  %s1720_s8 = inlined_call_operand.vmem [shape: f32[1,128], index: 8, kind: input, shape index: {}]   ;;  %s1721_s9 = inlined_call_operand.hbm [shape: f32[2,32,128], index: 9, kind: output, shape index: {}]  }
   0x1   :  { %1733 = sst [smem:[#allocation21_spill]] %s1713_s1 }
   0x2   :  { %1734 = sst [smem:[#allocation22_spill]] %s1717_s5 }
   0x3   :  { %1735 = sst [smem:[#allocation23_spill]] %s1719_s7 }
   0x4   :  { %1736 = sst [smem:[#allocation24_spill]] %s1720_s8 }
   0x5   :  { %1737 = sst [smem:[#allocation25_spill]] %s1721_s9 }
   0x6   :  { %14 = vsyncpa [#allocation3], 0 }
   0x7   :  { %16 = vsyncpa [#allocation3 + $0x1], 0 }
   0x8   :  { %17 = vsyncpa [#allocation6], 0 }
   0x9   :  { %18 = vsyncpa [#allocation9], 0 }
   0xa   :  { %19 = vsyncpa [#allocation4], 0 }
   0xb   :  { %21 = vsyncpa [#allocation4 + $0x1], 0  ;;  %s1442_s30 = smov 0   ;;  %s1444_s10 = smov 0  }
   0xc   :  { %s1446_s11 = smov 0   ;;  %s1448_s12 = smov 0  }
   0xd   :  { %s1450_s13 = smov 0   ;;  %s1452_s14 = smov 0  }
   0xe   :  { %s1454_s15 = smov 0   ;;  %s1456_s16 = smov 0  }
   0xf LB: > { %1738 = sst [smem:[#allocation15_spill]] %s1349_s30  ;;  %s917_s17 = sadd.s32 4294967295, %s1377_s16   ;;  %s1377_s16 = sphi %s1456_s16, %s27_s16   ;;  %s1373_s15 = sphi %s1454_s15, %s1774_s15   ;;  %s1369_s14 = sphi %s1452_s14, %s1769_s14   ;;  %s1365_s13 = sphi %s1450_s13, %s1773_s13   ;;  %s1361_s12 = sphi %s1448_s12, %s1768_s12   ;;  %s1357_s11 = sphi %s1446_s11, %s1772_s11   ;;  %s1353_s10 = sphi %s1444_s10, %s1771_s10   ;;  %s1349_s30 = sphi %s1442_s30, %s1770_s30  }
  0x10   : > { %1739 = sst [smem:[#allocation16_spill]] %s1365_s13  ;;  %s918_s18 = sadd.s32 4294967294, %s1377_s16  }
  0x11   : > { %1740 = sst [smem:[#allocation17_spill]] %s1369_s14  ;;  %p61_p0 = scmp.ne.s32.totalorder %s1353_s10, %s1349_s30 }
  0x12   : > { %p1486_p1 = scmp.eq.s32.totalorder %s917_s17, 0  ;;  %p1490_p2 = scmp.eq.s32.totalorder %s917_s17, 3 }
  0x13   : > { %p261_p3 = scmp.eq.s32.totalorder %s918_s18, 3  ;;  %p919_p5 = scmp.ge.s32.totalorder %s1377_s16, 1 }
  0x14   : > { %s1741_s19 = scalar_select %p1486_p1, 1, 0 }
  0x15   : > { %s1742_s20 = scalar_select %p1490_p2, 1, 0 }
  0x16   : > { %p1496_p4 = por %p1486_p1, %p61_p0  ;;  %p1501_p6 = por %p261_p3, %p61_p0 }
  0x17   : > { %p268_p7 = scmp.lt.s32.totalorder %s1377_s16, 5  ;;  %s1379_s24 = smov [#allocation5]  }
  0x18   : > { %s1743_s21 = scalar_select %p1496_p4, 1, 0 }
  0x19   : > { %s1744_s22 = scalar_select %p1501_p6, 1, 0 }
  0x1a   : > { %p1506_p8 = pnand %p919_p5, %p268_p7  ;;  %s281_s25 = sshll.u32 %s1379_s24, 4  ;;  %s282_s25 = int_to_ptr.vmem [resolvable:$true] %s281_s25 }
  0x1b   : > { %1745 = sst [smem:[#allocation18_spill]] %s1744_s22  ;;  %s1380_s26 = smov [#allocation7]  }
  0x1c   : > { %s1746_s23 = scalar_select %p1506_p8, 1, 0 }
  0x1d   : > { %p1038_p9 = pneg %p1506_p8  ;;  %s300_s27 = sshll.u32 %s1380_s26, 4  ;;  %s301_s27 = int_to_ptr.vmem [resolvable:$true] %s300_s27 }
  0x1e   : > { %s1381_s29 = smov [#allocation8]   ;;  %s1178_s18 = scalar_lea.vmem %s282_s25, 64 }
  0x1f   : > { %p1514_p10 = pnand %p1038_p9, %p1486_p1  ;;  %s316_s17 = sshll.u32 %s1381_s29, 4  ;;  %s317_s17 = int_to_ptr.vmem [resolvable:$true] %s316_s17 }
  0x20   : > { %p1179_p12 = scmp.ne.s32.totalorder %s282_s25, %s1178_s18  ;;  %p1186_p3 = scmp.lt.s32.totalorder %s282_s25, %s282_s25 }
  0x21   : > { %p1169_p11 = pneg %p1514_p10  ;;  %p1187_p5 = scmp.lt.s32.totalorder %s1178_s18, %s1178_s18 }
  0x23   : > { %p1181_p13 = pnand %p1179_p12, %p1169_p11  ;;  %p1188_p7 = por %p1187_p5, %p1186_p3 }
  0x25   : > { %p1182_p0 = pneg %p1181_p13 }
  0x27   : > { %p1189_p9 = pnand %p1188_p7, %p1182_p0 }
  0x29   : > { %1192 = shalt.err (!%p1189_p9)
}
  0x2a   : > { %s1748_s1 = sld [smem:[#allocation21_spill]]  ;;  %s1204_s29 = scalar_lea.vmem %s301_s27, 1024 }
  0x2b   : > { %p1205_p6 = scmp.ne.s32.totalorder %s301_s27, %s1204_s29  ;;  %p1212_p12 = scmp.lt.s32.totalorder %s301_s27, %s301_s27 }
  0x2c   : > { %p1213_p13 = scmp.lt.s32.totalorder %s1204_s29, %s1204_s29 }
  0x2d   : > { %p1207_p1 = pnand %p1205_p6, %p1169_p11 }
  0x2e   : > { %p1214_p8 = por %p1213_p13, %p1212_p12 }
  0x2f   : > { %p1208_p4 = pneg %p1207_p1 }
  0x30   : > { %1041 = dma.hbm_to_vmem [thread:$0]  (!%p1514_p10), %s1748_s1, 64, %s282_s25, [#allocation6]  }
  0x31   : > { %p1215_p2 = pnand %p1214_p8, %p1208_p4 }
  0x33   : > { %1218 = shalt.err (!%p1215_p2)
}
  0x34   : > { %s1382_s18 = smov 64   ;;  %s1383_s22 = smov 4  }
  0x35   : > { %s1749_s5 = sld [smem:[#allocation22_spill]]  ;;  %s1230_s25 = scalar_lea.vmem %s317_s17, 1024 }
  0x36   : > { %p1231_p0 = scmp.ne.s32.totalorder %s317_s17, %s1230_s25  ;;  %p1238_p3 = scmp.lt.s32.totalorder %s317_s17, %s317_s17 }
  0x37   : > { %p1239_p5 = scmp.lt.s32.totalorder %s1230_s25, %s1230_s25 }
  0x38   : > { %p1233_p1 = pnand %p1231_p0, %p1169_p11 }
  0x39   : > { %p1240_p4 = por %p1239_p5, %p1238_p3 }
  0x3a   : > { %p1234_p6 = pneg %p1233_p1 }
  0x3b   : > { %1044 = dma.hbm_to_vmem [thread:$0]  (!%p1514_p10), %s1749_s5, 1024, %s301_s27, [#allocation6], %s1382_s18, %s1382_s18, %s1383_s22  }
  0x3c   : > { %p1241_p2 = pnand %p1240_p4, %p1234_p6 }
  0x3e   : > { %1244 = shalt.err (!%p1241_p2)
}
  0x3f   : > { %s1750_s7 = sld [smem:[#allocation23_spill]]  ;;  %s36_s30 = sadd.s32 1, %s1369_s14 }
  0x40   : > { %p37_p8 = scmp.ge.s32.totalorder %s36_s30, 2  ;;  %s39_s27 = sadd.s32 1, %s1373_s15 }
  0x41   : > { %s48_s28 = sadd.s32 1, %s1357_s11  ;;  %p55_p11 = scmp.ne.s32.totalorder %s1357_s11, %s1353_s10 }
  0x42   : > { %s1776_s30 = smov (%p37_p8, %s36_s30), 0  ;;  %s1778_s27 = smov (!%p37_p8, %s39_s27), %s1373_s15 }
  0x43   : > { %1751 = sst [smem:[#allocation19_spill]] %s1776_s30  ;;  %s44_s24 = ssub.s32 %s1369_s14, %s1776_s30 }
  0x44   : > { %p56_p7 = scmp.eq.s32.totalorder %s1377_s16, 0  ;;  %p41_p9 = scmp.ge.s32.totalorder %s1778_s27, 2 }
  0x45   : > { %1047 = dma.hbm_to_vmem [thread:$0]  (!%p1514_p10), %s1750_s7, 1024, %s317_s17, [#allocation9], %s1382_s18, %s1382_s18, %s1383_s22  }
  0x46   : > { %p1752_p12 = scmp.ne.s32.totalorder %s1742_s20, 0  ;;  %p1561_p10 = por %p56_p7, %p55_p11 }
  0x47   : > { %p1059_p0 = scmp.lt.s32.totalorder %s1377_s16, 4  ;;  %s1780_s27 = smov (%p41_p9, %s1778_s27), 0 }
  0x48   : > { %p1557_p13 = por %p1752_p12, %p55_p11  ;;  %s333_s17 = sand.u32 1, %s1357_s11  }
  0x49   : > { %s925_s18 = sshll.u32 %s1369_s14, 2  ;;  %s43_s26 = ssub.s32 %s1373_s15, %s1780_s27 }
  0x4a   : > { %s1753_s25 = scalar_select %p1557_p13, 1, 0 }
  0x4b   : > { %s45_s29 = sor.u32 %s44_s24, %s43_s26  ;;  %s924_s1 = sshll.u32 %s333_s17, 5 }
  0x4c   : > { %1754 = sst [smem:[#allocation20_spill]] %s1753_s25  ;;  %p46_p1 = scmp.eq.s32.totalorder %s45_s29, 0 }
  0x4d   : > { %s926_s20 = sshll.u32 %s1373_s15, 3  ;;  %s337_s5 = scalar_lea.vmem [#allocation2], %s924_s1 }
  0x4e   : > { %s346_s7 = sshll.u32 %s337_s5, 4  ;;  %s343_s9 = sadd.s32 %s926_s20, %s925_s18  ;;  %s347_s7 = int_to_ptr.vmem [resolvable:$true] %s346_s7 }
  0x4f   : > { %s1574_s30 = scalar_select %p46_p1, %s1357_s11, %s48_s28  }
  0x50   : > { %s927_s25 = sshll.u32 %s343_s9, 7  ;;  %p1580_p6 = pnand %p1059_p0, %p1561_p10 }
  0x51   : > { %s345_s24 = scalar_lea.hbm %s1712_s0, %s927_s25  ;;  %s334_s26 = scalar_lea.sflag [#allocation3], %s333_s17 }
  0x52   : > { %p1247_p3 = pneg %p1580_p6  ;;  %s1258_s1 = scalar_lea.vmem %s347_s7, 512 }
  0x53   : > { %p1259_p5 = scmp.ne.s32.totalorder %s347_s7, %s1258_s1  ;;  %s1384_s5 = smov [#allocation2]  }
  0x54   : > { %s1263_s9 = sshll.u32 %s1384_s5, 4  ;;  %s1264_s9 = int_to_ptr.vmem [resolvable:$false] %s1263_s9 }
  0x55   : > { %p1261_p4 = pnand %p1259_p5, %p1247_p3  ;;  %s1265_s28 = scalar_lea.vmem %s1264_s9, 1024 }
  0x56   : > { %p1266_p8 = scmp.lt.s32.totalorder %s347_s7, %s1264_s9  ;;  %p1267_p11 = scmp.lt.s32.totalorder %s1265_s28, %s1258_s1 }
  0x57   : > { %p1262_p2 = pneg %p1261_p4 }
  0x58   : > { %p1268_p7 = por %p1267_p11, %p1266_p8 }
  0x5a   : > { %p1269_p9 = pnand %p1268_p7, %p1262_p2 }
  0x5c   : > { %1272 = shalt.err (!%p1269_p9)
}
  0x5d   : > { %s1385_s22 = smov 128   ;;  %s1386_s13 = smov 8  }
  0x5e   : > { %1051 = dma.hbm_to_vmem [thread:$0]  (!%p1580_p6), %s345_s24, 512, %s347_s7, %s334_s26, %s1385_s22, %s1385_s22, %s1386_s13  }
  0x5f   : > { %p1757_p12 = scmp.ne.s32.totalorder %s1746_s23, 0 }
  0x60   : > { %s1594_s14 = sand.u32 (!%p1757_p12), 1, %s1353_s10   ;;  %p1758_p10 = scmp.ne.s32.totalorder (!%p1757_p12), %s1743_s21, 0 }
  0x61   : > { %358 = sbr.rel (%p1757_p12) target bundleno = 898 (0x382), region = 56  ;;  %s929_s25 = sshll.u32 (!%p1757_p12), %s1594_s14, 5 }
  0x62   : > { %s361_s17 = scalar_lea.sflag (!%p1757_p12), [#allocation3], %s1594_s14  ;;  %s364_s18 = scalar_lea.vmem (!%p1757_p12), [#allocation2], %s929_s25 }
  0x66   : > { %1332 = dma.done.wait (%p1758_p10), %s361_s17, 512  }
  0x67   : > { %1334 = vsyncadd (%p1758_p10), %s361_s17, 4294966784  ;;  %p1759_p0 = scmp.ne.s32.totalorder %s1741_s19, 0 }
  0x69   : > { %1336 = dma.done.wait (%p1759_p0), [#allocation6], 1088  }
  0x6a   : > { %1338 = vsyncadd (%p1759_p0), [#allocation6], 4294966208 }
  0x6b   : > { %1340 = dma.done.wait (%p1759_p0), [#allocation9], 1024  }
  0x6c   : > { %1342 = vsyncadd (%p1759_p0), [#allocation9], 4294966272  ;;  %v1610_v0 = vld [vmem:[%s364_s18 + $0x8] sm:$0xff]  ;;  %v934_v1 = vld [vmem:[%s1714_s2] ss:$0 sm:$0xff]  ;;  %v1387_v23 = vmov 0.0   ;;  %v461_v24 = vlaneseq }
  0x6d   : > { %v422_v2 = vld [vmem:[%s364_s18 + $0x7] sm:$0xff]  ;;  %v935_v3 = vld [vmem:[#allocation5] ss:$0 sm:$0xff]  ;;  %v936_v4 = vld [vmem:[#allocation5 + $0x1] ss:$0 sm:$0xff]  ;;  %982 = vmatprep.subr.bf16.mxu0 %v1387_v23  ;;  %1002 = vmatprep.subr.bf16.mxu1 %v1387_v23  ;;  %vm1388_vm1 = vmmov 0  }
  0x6e   : > { %v442_v5 = vld [vmem:[%s364_s18 + $0x9] sm:$0xff]  ;;  %v429_v6 = vmul.f32 %v935_v3, %v422_v2  ;;  %v438_v7 = vmul.f32 %v936_v4, %v1610_v0  ;;  %v937_v8 = vld [vmem:[#allocation5 + $0x2] ss:$0 sm:$0xff]  ;;  %v443_v13 = vld [vmem:[%s364_s18 + $0x11] sm:$0xff]  ;;  %v462_v25 = vand.u32 127, %v461_v24  ;;  %998 = vmatprep.mubr.msk.bf16.mxu0 %vm1388_vm1, %v1387_v23  ;;  %1018 = vmatprep.mubr.msk.bf16.mxu1 %vm1388_vm1, %v1387_v23  ;;  %s1760_s26 = sld [smem:[#allocation16_spill]] }
  0x6f   : > { %v1616_v9 = vld [vmem:[%s364_s18 + $0x10] sm:$0xff]  ;;  %v449_v15 = vmul.f32 %v937_v8, %v442_v5  ;;  %v450_v18 = vmul.f32 %v937_v8, %v443_v13  ;;  %v1139_v22 = vld [vmem:[#allocation7 + $0x38] sm:$0xff]   ;;  %v1142_v38 = vld [vmem:[#allocation7 + $0x20] sm:$0xff]   ;;  %s959_s1 = sshll.u32 %s1361_s12, 1  ;;  %s933_s9 = sshll.u32 %s1594_s14, 4 }
  0x70   : > { %v423_v10 = vld [vmem:[%s364_s18 + $0xf] sm:$0xff]  ;;  %v439_v12 = vmul.f32 %v936_v4, %v1616_v9  ;;  %v431_v14 = vadd.f32 %v934_v1, %v429_v6  ;;  %983 = vmatpush3.bf16.msra.mxu0 %v1139_v22  ;;  %vm463_vm0 = vcmp.lt.s32.totalorder %v462_v25, 8  ;;  %v1143_v39 = vld [vmem:[#allocation7 + $0x18] sm:$0xff]   ;;  %v1146_v42 = vld [vmem:[#allocation7] sm:$0xff]   ;;  %s1761_s13 = sld [smem:[#allocation24_spill]]  ;;  %s410_s17 = scalar_lea.vmem [#allocation10], %s933_s9 }
  0x71   : > { %v430_v11 = vmul.f32 %v935_v3, %v423_v10  ;;  %984 = vmatprep.subr.bf16.mxu0 %v1387_v23  ;;  %v1140_v36 = vld [vmem:[#allocation7 + $0x30] sm:$0xff]   ;;  %v1141_v37 = vld [vmem:[#allocation7 + $0x28] sm:$0xff]   ;;  %v938_v51 = vld [vmem:[%s1715_s3] ss:$0 sm:$0xff]  ;;  %s798_s7 = sshll.u32 %s410_s17, 4  ;;  %s1763_s21 = sld [smem:[#allocation25_spill]]  ;;  %s1653_s7 = int_to_ptr.vmem [resolvable:$true] %s798_s7 }
  0x72   : > { %v440_v17 = vadd.f32 %v438_v7, %v431_v14  ;;  %v1144_v40 = vld [vmem:[#allocation7 + $0x10] sm:$0xff]   ;;  %v1145_v41 = vld [vmem:[#allocation7 + $0x8] sm:$0xff]   ;;  %v939_v55 = vld [vmem:[%s1716_s4] ss:$0 sm:$0xff]  ;;  %s783_s29 = scalar_lea.sflag [#allocation4], %s1594_s14  ;;  %s1273_s20 = scalar_lea.vmem %s1653_s7, 256 }
  0x73   : > { %v432_v16 = vadd.f32 %v934_v1, %v430_v11  ;;  %v1147_v60 = vld [vmem:[#allocation8 + $0x38] sm:$0xff]   ;;  %v1148_v61 = vld [vmem:[#allocation8 + $0x30] sm:$0xff]   ;;  %v1149_v62 = vld [vmem:[#allocation8 + $0x28] sm:$0xff]   ;;  %p1274_p1 = scmp.ne.s32.totalorder %s1653_s7, %s1273_s20  ;;  %s1389_s24 = smov [#allocation10]  }
  0x74   : > { %v451_v20 = vadd.f32 %v449_v15, %v440_v17  ;;  %985 = vmatpush3.bf16.msra.mxu0 %v1140_v36  ;;  %1003 = vmatpush3.bf16.msra.mxu1 %v1147_v60  ;;  %v1150_v63 = vld [vmem:[#allocation8 + $0x20] sm:$0xff]   ;;  %v1151_v1 = vld [vmem:[#allocation8 + $0x18] sm:$0xff]   ;;  %v1152_v2 = vld [vmem:[#allocation8 + $0x10] sm:$0xff]   ;;  %s960_s5 = sshll.u32 %s1760_s26, 2  ;;  %s1277_s26 = sshll.u32 %s1389_s24, 4  ;;  %s1278_s26 = int_to_ptr.vmem [resolvable:$false] %s1277_s26 }
  0x75   : > { %v441_v19 = vadd.f32 %v439_v12, %v432_v16  ;;  %986 = vmatprep.subr.bf16.mxu0 %v1387_v23  ;;  %1004 = vmatprep.subr.bf16.mxu1 %v1387_v23  ;;  %v1153_v3 = vld [vmem:[#allocation8 + $0x8] sm:$0xff]   ;;  %v1154_v4 = vld [vmem:[#allocation8] sm:$0xff]   ;;  %v940_v5 = vld [vmem:[%s1718_s6] ss:$0 sm:$0xff]  ;;  %s795_s25 = sadd.s32 %s960_s5, %s959_s1  ;;  %p1275_p6 = pnand %p1274_p1, %p1557_p13 }
  0x76   : > { %453 = vadd.xlane.f32.xlu0 %v451_v20  ;;  %s961_s8 = sshll.u32 %s795_s25, 7  ;;  %s1279_s1 = scalar_lea.vmem %s1278_s26, 512 }
  0x77   : > { %v452_v21 = vadd.f32 %v450_v18, %v441_v19  ;;  %s1658_s23 = scalar_lea.hbm %s1763_s21, %s961_s8  ;;  %p1276_p3 = pneg %p1275_p6 }
  0x78   : > { %987 = vmatpush3.bf16.msra.mxu0 %v1141_v37  ;;  %1005 = vmatpush3.bf16.msra.mxu1 %v1148_v61  ;;  %p1280_p5 = scmp.lt.s32.totalorder %s1653_s7, %s1278_s26  ;;  %p1281_p4 = scmp.lt.s32.totalorder %s1279_s1, %s1273_s20 }
  0x79   : > { %988 = vmatprep.subr.bf16.mxu0 %v1387_v23  ;;  %1006 = vmatprep.subr.bf16.mxu1 %v1387_v23 }
  0x7a   : > { %455 = vadd.xlane.f32.xlu0 %v452_v21  ;;  %p1282_p2 = por %p1281_p4, %p1280_p5 }
  0x7c   : > { %989 = vmatpush3.bf16.msra.mxu0 %v1142_v38  ;;  %1007 = vmatpush3.bf16.msra.mxu1 %v1149_v62  ;;  %p1283_p8 = pnand %p1282_p2, %p1276_p3 }
  0x7d   : > { %990 = vmatprep.subr.bf16.mxu0 %v1387_v23  ;;  %1008 = vmatprep.subr.bf16.mxu1 %v1387_v23 }
  0x80   : > { %991 = vmatpush3.bf16.msra.mxu0 %v1143_v39  ;;  %1009 = vmatpush3.bf16.msra.mxu1 %v1150_v63 }
  0x81   : > { %992 = vmatprep.subr.bf16.mxu0 %v1387_v23  ;;  %1010 = vmatprep.subr.bf16.mxu1 %v1387_v23 }
  0x84   : > { %993 = vmatpush3.bf16.msra.mxu0 %v1144_v40  ;;  %1011 = vmatpush3.bf16.msra.mxu1 %v1151_v1  ;;  %v949_v1 = vld [vmem:[%s1761_s13] ss:$0 sm:$0xff] }
  0x85   : > { %994 = vmatprep.subr.bf16.mxu0 %v1387_v23  ;;  %1012 = vmatprep.subr.bf16.mxu1 %v1387_v23 }
  0x88   : > { %995 = vmatpush3.bf16.msra.mxu0 %v1145_v41  ;;  %1013 = vmatpush3.bf16.msra.mxu1 %v1152_v2 }
  0x89   : > { %996 = vmatprep.subr.bf16.mxu0 %v1387_v23  ;;  %1014 = vmatprep.subr.bf16.mxu1 %v1387_v23 }
  0x8c   : > { %997 = vmatpush3.bf16.msra.mxu0 %v1146_v42  ;;  %1015 = vmatpush3.bf16.msra.mxu1 %v1153_v3 }
  0x8d   : > { %1016 = vmatprep.subr.bf16.mxu1 %v1387_v23 }
  0x90   : > { %1017 = vmatpush3.bf16.msra.mxu1 %v1154_v4 }
  0xff   : > { %v454_v26 = vpop.xlane.xlu0 %453 }
 0x100   : > { %v457_v27 = vmul.f32 0.125, %v454_v26 }
 0x102   : > { %v459_v28 = vsub.f32 %v451_v20, %v457_v27 }
 0x103   : > { %v456_v29 = vpop.xlane.xlu0 %455 }
 0x104   : > { %v458_v30 = vmul.f32 0.125, %v456_v29  ;;  %v466_v31 = vsel %vm463_vm0, %v459_v28, 0.0 }
 0x105   : > { %v468_v32 = vmul.f32 %v466_v31, %v466_v31 }
 0x106   : > { %v460_v33 = vsub.f32 %v452_v21, %v458_v30 }
 0x107   : > { %470 = vadd.xlane.f32.xlu1 %v468_v32 }
 0x108   : > { %v467_v34 = vsel %vm463_vm0, %v460_v33, 0.0 }
 0x109   : > { %v469_v35 = vmul.f32 %v467_v34, %v467_v34 }
 0x10b   : > { %472 = vadd.xlane.f32.xlu1 %v469_v35 }
 0x190   : > { %v471_v43 = vpop.xlane.xlu1 %470 }
 0x191   : > { %v474_v44 = vmul.f32 0.125, %v471_v43 }
 0x193   : > { %v476_v45 = vadd.f32 1e-06, %v474_v44 }
 0x194   : > { %v473_v46 = vpop.xlane.xlu1 %472 }
 0x195   : > { %1155 = vrsqrt.f32 %v476_v45  ;;  %v475_v47 = vmul.f32 0.125, %v473_v46 }
 0x197   : > { %v477_v48 = vadd.f32 1e-06, %v475_v47 }
 0x199   : > { %1157 = vrsqrt.f32 %v477_v48 }
 0x1a2   : > { %v1156_v49 = vpop.eup %1155 }
 0x1a3   : > { %v480_v50 = vmul.f32 %v1156_v49, %v466_v31 }
 0x1a5   : > { %v489_v54 = vmul.f32 %v938_v51, %v480_v50 }
 0x1a6   : > { %v1158_v52 = vpop.eup %1157 }
 0x1a7   : > { %v481_v53 = vmul.f32 %v1158_v52, %v467_v34  ;;  %v498_v57 = vadd.f32 %v939_v55, %v489_v54 }
 0x1a9   : > { %v490_v56 = vmul.f32 %v938_v51, %v481_v53 }
 0x1ab   : > { %v499_v58 = vadd.f32 %v939_v55, %v490_v56 }
 0x1ad   : > { %v500_v59 = vpack.c.bf16 %v499_v58, %v498_v57 }
 0x1af   : > { %999 = vmatmul.mubr.bf16.vlgmr.msra.gmra.mxu0 %v500_v59 }
 0x26f   : > { %v606_v6 = vpop.f32.mrf.mxu0 }
 0x270   : > { %v607_v7 = vadd.f32 %v940_v5, %v606_v6 }
 0x271   : > { %v1000_v8 = vpop.f32.mrf.mxu0 }
 0x272   : > { %v615_v10 = vmul.f32 0.70710677, %v607_v7  ;;  %v613_v58 = vmul.f32 0.5, %v607_v7 }
 0x273   : > { %v609_v11 = vpop.f32.mrf.mxu0 }
 0x274   : > { %v617_v12 = vand.u32 2147483647, %v615_v10  ;;  %v610_v13 = vadd.f32 %v940_v5, %v609_v11  ;;  %vm655_vm2 = vcmp.ge.f32.partialorder %v615_v10, 0.0 }
 0x275   : > { %v1001_v14 = vpop.f32.mrf.mxu0 }
 0x276   : > { %v619_v15 = vmul.f32 0.3275911, %v617_v12  ;;  %v616_v16 = vmul.f32 0.70710677, %v610_v13  ;;  %v643_v21 = vsub.f32 0.0, %v617_v12  ;;  %v614_v59 = vmul.f32 0.5, %v610_v13 }
 0x278   : > { %v621_v17 = vadd.f32 1.0, %v619_v15  ;;  %v618_v18 = vand.u32 2147483647, %v616_v16  ;;  %v645_v22 = vmul.f32 %v643_v21, %v617_v12  ;;  %vm656_vm3 = vcmp.ge.f32.partialorder %v616_v16, 0.0 }
 0x27a   : > { %1159 = vrcp.f32 %v621_v17  ;;  %v620_v19 = vmul.f32 0.3275911, %v618_v18  ;;  %v644_v23 = vsub.f32 0.0, %v618_v18  ;;  %v647_v26 = vmul.f32 1.442695, %v645_v22 }
 0x27c   : > { %v622_v20 = vadd.f32 1.0, %v620_v19  ;;  %v646_v27 = vmul.f32 %v644_v23, %v618_v18 }
 0x27e   : > { %1161 = vrcp.f32 %v622_v20  ;;  %v649_v32 = vmul.f32 1.442695, %v646_v27 }
 0x27f   : > { %1163 = vpow2.f32 %v647_v26 }
 0x280   : > { %1165 = vpow2.f32 %v649_v32 }
 0x287   : > { %v1160_v24 = vpop.eup %1159 }
 0x288   : > { %v625_v25 = vmul.f32 1.0614054, %v1160_v24 }
 0x28a   : > { %v627_v28 = vadd.f32 -1.4531521, %v625_v25 }
 0x28b   : > { %v1162_v29 = vpop.eup %1161 }
 0x28c   : > { %v629_v30 = vmul.f32 %v1160_v24, %v627_v28  ;;  %v626_v31 = vmul.f32 1.0614054, %v1162_v29  ;;  %v1164_v45 = vpop.eup %1163 }
 0x28d   : > { %v1166_v50 = vpop.eup %1165 }
 0x28e   : > { %v631_v33 = vadd.f32 1.4214138, %v629_v30  ;;  %v628_v34 = vadd.f32 -1.4531521, %v626_v31 }
 0x290   : > { %v633_v35 = vmul.f32 %v1160_v24, %v631_v33  ;;  %v630_v36 = vmul.f32 %v1162_v29, %v628_v34 }
 0x292   : > { %v635_v37 = vadd.f32 -0.28449672, %v633_v35  ;;  %v632_v38 = vadd.f32 1.4214138, %v630_v36 }
 0x294   : > { %v637_v39 = vmul.f32 %v1160_v24, %v635_v37  ;;  %v634_v40 = vmul.f32 %v1162_v29, %v632_v38 }
 0x296   : > { %v639_v41 = vadd.f32 0.2548296, %v637_v39  ;;  %v636_v42 = vadd.f32 -0.28449672, %v634_v40 }
 0x298   : > { %v641_v43 = vmul.f32 %v1160_v24, %v639_v41  ;;  %v638_v44 = vmul.f32 %v1162_v29, %v636_v42 }
 0x29a   : > { %v651_v46 = vmul.f32 %v1164_v45, %v641_v43  ;;  %v640_v47 = vadd.f32 0.2548296, %v638_v44 }
 0x29c   : > { %v653_v48 = vsub.f32 1.0, %v651_v46  ;;  %v642_v49 = vmul.f32 %v1162_v29, %v640_v47 }
 0x29e   : > { %v657_v51 = vsub.f32 0.0, %v653_v48  ;;  %v652_v52 = vmul.f32 %v1166_v50, %v642_v49 }
 0x2a0   : > { %v659_v53 = vsel %vm655_vm2, %v653_v48, %v657_v51  ;;  %v654_v54 = vsub.f32 1.0, %v652_v52 }
 0x2a1   : > { %v661_v56 = vadd.f32 1.0, %v659_v53 }
 0x2a2   : > { %v658_v55 = vsub.f32 0.0, %v654_v54 }
 0x2a3   : > { %v663_v61 = vmul.f32 %v661_v56, %v613_v58 }
 0x2a4   : > { %v660_v57 = vsel %vm656_vm3, %v654_v54, %v658_v55 }
 0x2a5   : > { %v662_v60 = vadd.f32 1.0, %v660_v57 }
 0x2a7   : > { %v664_v62 = vmul.f32 %v662_v60, %v614_v59 }
 0x2a9   : > { %v665_v63 = vpack.c.bf16 %v664_v62, %v663_v61 }
 0x2ab   : > { %1019 = vmatmul.mubr.bf16.vlgmr.msra.gmra.mxu1 %v665_v63 }
 0x36b   : > { %v771_v2 = vpop.f32.mrf.mxu1 }
 0x36c   : > { %v772_v3 = vadd.f32 %v949_v1, %v771_v2 }
 0x36d   : > { %v1020_v4 = vpop.f32.mrf.mxu1 }
 0x36e   : > { %v778_v5 = vadd.f32 %v772_v3, %v1610_v0 }
 0x36f   : > { %v774_v6 = vpop.f32.mrf.mxu1 }
 0x370   : > { %780 = vst [vmem:[%s410_s17] sm:$0xff] %v778_v5  ;;  %v775_v7 = vadd.f32 %v949_v1, %v774_v6 }
 0x371   : > { %v1021_v8 = vpop.f32.mrf.mxu1 }
 0x372   : > { %v779_v10 = vadd.f32 %v775_v7, %v1616_v9 }
 0x374   : > { %781 = vst [vmem:[%s410_s17 + $0x8] sm:$0xff] %v779_v10 }
 0x375   : > { %1286 = shalt.err (!%p1283_p8)
}
 0x376   : > { %s1287_s5 = scalar_lea.hbm %s1658_s23, 256  ;;  %s1291_s22 = scalar_lea.hbm %s1763_s21, 1024 }
 0x377   : > { %p1288_p11 = scmp.ne.s32.totalorder %s1658_s23, %s1287_s5  ;;  %p1292_p12 = scmp.lt.s32.totalorder %s1658_s23, %s1763_s21 }
 0x378   : > { %p1293_p10 = scmp.lt.s32.totalorder %s1291_s22, %s1287_s5 }
 0x379   : > { %p1289_p7 = pnand %p1288_p11, %p1557_p13 }
 0x37a   : > { %p1294_p0 = por %p1293_p10, %p1292_p12 }
 0x37b   : > { %p1290_p9 = pneg %p1289_p7 }
 0x37d   : > { %p1295_p1 = pnand %p1294_p0, %p1290_p9 }
 0x37f   : > { %1298 = shalt.err (!%p1295_p1)
}
 0x380   : > { %s1390_s17 = smov 128   ;;  %s1391_s8 = smov 8  }
 0x381   : > { %1036 = dma.vmem_to_hbm [thread:$0]  (%p1557_p13), %s1653_s7, 256, %s1658_s23, %s783_s29, %s1390_s17, %s1390_s17, %s1391_s8  }
 0x382 PF: > { %s1764_s12 = sld [smem:[#allocation15_spill]]  ;;  %p1063_p6 = scmp.ge.s32.totalorder %s1377_s16, 2 }
 0x383   : > { %s1765_s19 = sld [smem:[#allocation18_spill]] }
 0x388   : > { %s813_s20 = sand.u32 1, %s1764_s12  }
 0x389   : > { %p1766_p3 = scmp.ne.s32.totalorder %s1765_s19, 0  ;;  %s814_s24 = scalar_lea.sflag [#allocation4], %s813_s20 }
 0x38b   : > { %p1053_p5 = pnand %p1063_p6, %p1766_p3 }
 0x38d   : > { %p1054_p4 = pneg %p1053_p5 }
 0x38f   : > { %1344 = dma.done.wait (%p1054_p4), %s814_s24, 256  }
 0x390   : > { %1346 = vsyncadd (%p1054_p4), %s814_s24, 4294967040  ;;  %s27_s16 = sadd.s32 1, %s1377_s16   ;;  %s1767_s18 = smov %s1574_s30 }
 0x391   : > { %p24_p2 = scmp.ge.s32.totalorder %s27_s16, 6   ;;  %s1768_s12 = sld [smem:[#allocation17_spill]] }
 0x392   : > { %s1769_s14 = sld [smem:[#allocation19_spill]]  ;;  %s1770_s30 = smov %s1353_s10 }
 0x393   : > { %s1771_s10 = smov %s1357_s11  ;;  %s1772_s11 = smov %s1767_s18 }
 0x394   : > { %s1773_s13 = smov %s1373_s15  ;;  %s1774_s15 = smov %s1780_s27 }
 0x395   :  { %26 = sbr.rel (!%p24_p2) target bundleno = 15 (0xf), region = 113 }
 0x39a   :  { %819 = vsyncpa [#allocation3], 1 }
 0x39b   :  { %821 = vsyncpa [#allocation3 + $0x1], 1 }
 0x39c   :  { %822 = vsyncpa [#allocation6], 1 }
 0x39d   :  { %823 = vsyncpa [#allocation9], 1 }
 0x39e   :  { %824 = vsyncpa [#allocation4], 1 }
 0x39f   :  { %826 = vsyncpa [#allocation4 + $0x1], 1 }

</bundles_post_ra>
